<compile_context>
chip_gen: v7x
topology: tpu7x:2x2x1
jax: 0.10.0
libtpu: 0.0.40
codegen_flags: <defaults>
</compile_context>

<pallas_src>
import numpy as np
import jax
import jax.numpy as jnp
from jax.experimental import pallas as pl
from jax.experimental.pallas import tpu as pltpu

EPS = 1e-5            # PyTorch BatchNorm default eps

# ----------------------------- model configuration ---------------------------
CH_SIZE = 4           # ch_size
K_SIZE = 3            # conv / maxpool kernel size (k_size; stride s_size=1, pad p_size=1)
BATCH = 2
IN_H = IN_W = 8       # 1x8x8 input
# spatial sizes through the stack: 8 -(conv p=1)-> 8 -(pool)-> 6 -> 6 -> 4 -> 4 -> 2
H3 = W3 = 2
C3 = CH_SIZE * 4                  # 16
FINAL_SIZE = C3 * H3 * W3         # 64  (the module's effective final_size)
FC1, FC2 = 512, 32

# per conv layer: (Cin, Cout, spatial width W at the conv input/output)
_LAYERS = ((1, CH_SIZE, 8), (CH_SIZE, 2 * CH_SIZE, 6), (2 * CH_SIZE, 4 * CH_SIZE, 4))
_CW_K, _CW_N = 32, 64             # padded (K, N) of the packed banded conv-weight slab


# ------------------------- in-kernel helper functions ------------------------
def _conv3x3_bn_relu(act, wb, bias_row):
    """3x3 / stride-1 / pad-1 conv (+folded eval-BN) + ReLU on a (H, W*Cin) value.

    Zero padding, the three column taps and the Cin contraction are pre-folded
    into the banded matrices wb[dr] of shape (W*Cin, W*Cout); the three row taps
    become two row-shifted copies of `act`, so the conv is 3 MXU dots + 2 adds.
    """
    h, wc = act.shape
    zrow = jnp.zeros((1, wc), jnp.float32)
    down = jnp.concatenate([zrow, act[0:h - 1, :]], axis=0)   # row oh -> act[oh-1]
    up = jnp.concatenate([act[1:h, :], zrow], axis=0)         # row oh -> act[oh+1]
    acc = (jnp.dot(down, wb[0], preferred_element_type=jnp.float32)
           + jnp.dot(act, wb[1], preferred_element_type=jnp.float32)
           + jnp.dot(up, wb[2], preferred_element_type=jnp.float32))
    return jnp.maximum(acc + bias_row, 0.0)


def _maxpool3x3_s1(y, c):
    """3x3 / stride-1 max pool on a (H, W*C) value -> (H-2, (W-2)*C)."""
    h = y.shape[0]
    w = y.shape[1] // c
    oh, ow = h - K_SIZE + 1, w - K_SIZE + 1
    m = None
    for di in range(K_SIZE):
        for dj in range(K_SIZE):
            v = y[di:di + oh, dj * c:(dj + ow) * c]
            m = v if m is None else jnp.maximum(m, v)
    return m


# ------------------------------ fused kernel ---------------------------------
def _convnet_kernel(x_ref, cw_ref, bias_ref, fw1_ref, fw2_ref, fw3_ref, o_ref):
    batch = x_ref.shape[0]

    # Hoist all conv weight / bias loads out of the batch loop (loaded once).
    conv_w, conv_b = [], []
    for l, (cin, cout, w_sp) in enumerate(_LAYERS):
        kdim, ndim = w_sp * cin, w_sp * cout
        conv_w.append([cw_ref[3 * l + dr, 0:kdim, 0:ndim] for dr in range(3)])
        conv_b.append(bias_ref[l:l + 1, 0:ndim])
    fb1 = bias_ref[3:4, 0:FC1]
    fb2 = bias_ref[4:5, 0:FC2]
    fb3 = bias_ref[5:6, 0:1]

    # Conv tower: one tiny (H, W*C) value per batch element (B=2 -> unrolled).
    feats = []
    for b in range(batch):
        act = x_ref[b]                                    # (8, 8) == (H, W*Cin), Cin=1
        for l in range(3):
            act = _conv3x3_bn_relu(act, conv_w[l], conv_b[l])
            act = _maxpool3x3_s1(act, _LAYERS[l][1])
        # act: (2, 32) -> (1, 64) lane order (h, w, c); fw1 rows are permuted to match.
        feats.append(jnp.concatenate([act[0:1, :], act[1:2, :]], axis=1))
    f = jnp.concatenate(feats, axis=0)                    # (B, 64)

    # FC head: Linear -> BN1d(eval, folded) -> Dropout(eval=id) -> ReLU  (x2),
    # then Linear -> Sigmoid (numerically-stable tanh form).
    h1 = jnp.maximum(jnp.dot(f, fw1_ref[...], preferred_element_type=jnp.float32) + fb1, 0.0)
    h2 = jnp.maximum(jnp.dot(h1, fw2_ref[...], preferred_element_type=jnp.float32) + fb2, 0.0)
    z = jnp.sum(h2 * fw3_ref[...], axis=1, keepdims=True) + fb3       # (B, 1)
    o_ref[...] = 0.5 * (jnp.tanh(0.5 * z) + 1.0)


# ------------------------------- host wrapper --------------------------------
@jax.jit
def convnet_forward(x_nchw, params):
    b = x_nchw.shape[0]
    x = x_nchw.reshape(b, IN_H, IN_W)      # Cin=1: NCHW -> (B, H, W*Cin), free reshape
    args = (x, params["conv_w"], params["biases"],
            params["fw1"], params["fw2"], params["fw3"])
    return pl.pallas_call(
        _convnet_kernel,
        out_shape=jax.ShapeDtypeStruct((b, 1), jnp.float32),
        in_specs=[pl.BlockSpec(memory_space=pltpu.MemorySpace.VMEM) for _ in args],
        out_specs=pl.BlockSpec(memory_space=pltpu.MemorySpace.VMEM),
        # Grid-less single invocation on purpose: the whole problem is ~300 KiB of
        # weights and <0.5 MFLOP, so a grid would only add per-step overhead.  If
        # batch ever grows, add a leading batch grid axis with
        # dimension_semantics=("parallel",) to use both v7x TensorCores.
    )(*args)


# ----------------------------- parameter prep --------------------------------
def init_params(key):
    """Deterministic synthetic init matching the module's structure:
    conv/linear weights ~ N(0, 0.02), biases 0, BatchNorm at PyTorch defaults
    (gamma=1, beta=0, running_mean=0, running_var=1).  Eval-mode BN, conv bias,
    zero padding and the 3x3 column taps are folded into banded conv operators;
    torch's NCHW flatten order is folded into a row permutation of fw1.
    NOTE: synthetic conv weights are generated directly in HWIO (kh,kw,cin,cout);
    real PyTorch Conv2d weights are OIHW and would need .transpose(2,3,1,0),
    and torch Linear weights are (out,in) and would need a .T, before this fold."""
    ks = jax.random.split(key, 6)

    def bn_fold(n, gamma=1.0, beta=0.0, mean=0.0, var=1.0):
        scale = gamma / np.sqrt(var + EPS)
        return (np.full((n,), scale, np.float32),
                np.full((n,), beta - mean * scale, np.float32))

    conv_w = np.zeros((9, _CW_K, _CW_N), np.float32)      # packed banded conv slab
    biases = np.zeros((6, FC1), np.float32)               # packed bias rows
    for l, (cin, cout, w_sp) in enumerate(_LAYERS):
        w = 0.02 * np.asarray(jax.random.normal(ks[l], (K_SIZE, K_SIZE, cin, cout), jnp.float32))
        b = np.zeros((cout,), np.float32)
        sc, sh = bn_fold(cout)
        w_eff = w * sc                                    # fold eval-BN scale per cout
        b_eff = b * sc + sh
        # Banded operator: out[oh, ow*cout+co] += in[oh+dr-1, iw*cin+ci] * w_eff[dr, iw-ow+1, ci, co]
        for dr in range(K_SIZE):
            for ow in range(w_sp):
                for dj in range(K_SIZE):
                    iw = ow + dj - 1                      # zero padding: OOB taps dropped
                    if 0 <= iw < w_sp:
                        conv_w[3 * l + dr,
                               iw * cin:(iw + 1) * cin,
                               ow * cout:(ow + 1) * cout] = w_eff[dr, dj]
        biases[l, :w_sp * cout] = np.tile(b_eff, w_sp)

    w1 = 0.02 * np.asarray(jax.random.normal(ks[3], (FINAL_SIZE, FC1), jnp.float32))
    w2 = 0.02 * np.asarray(jax.random.normal(ks[4], (FC1, FC2), jnp.float32))
    w3 = 0.02 * np.asarray(jax.random.normal(ks[5], (1, FC2), jnp.float32))
    b1 = np.zeros((FC1,), np.float32)
    b2 = np.zeros((FC2,), np.float32)
    b3 = np.zeros((1,), np.float32)
    s1, t1 = bn_fold(FC1)
    s2, t2 = bn_fold(FC2)
    w1f, w2f = w1 * s1, w2 * s2
    biases[3, :FC1] = b1 * s1 + t1
    biases[4, :FC2] = b2 * s2 + t2
    biases[5, :1] = b3
    # Fold torch's NCHW flatten (row index = c*H3*W3 + h*W3 + w) into fw1 so the
    # kernel can consume pooled features in (h, w, c) lane order directly.
    w1hwc = (w1f.reshape(C3, H3, W3, FC1)
                 .transpose(1, 2, 0, 3)
                 .reshape(FINAL_SIZE, FC1))

    return {"conv_w": jnp.asarray(conv_w),
            "biases": jnp.asarray(biases),
            "fw1": jnp.asarray(w1hwc),
            "fw2": jnp.asarray(w2f),
            "fw3": jnp.asarray(w3)}


# ------------------------------------ main ------------------------------------
if __name__ == "__main__":
    key = jax.random.PRNGKey(0)
    k_in, k_par = jax.random.split(key)
    x = jax.random.normal(k_in, (BATCH, 1, IN_H, IN_W), jnp.float32)  # NCHW like torch
    params = init_params(k_par)

    out = jax.block_until_ready(convnet_forward(x, params))
    assert out.shape == (BATCH, 1)
    assert bool(jnp.all(jnp.isfinite(out)))
    assert bool(jnp.all((out >= 0.0) & (out <= 1.0)))
    print("KERNEL_OK")
</pallas_src>

<mosaic_0001>
module attributes {stable_mosaic.version = 11 : i64} {
  func.func @_convnet_kernel(%arg0: memref<2x8x8xf32, #tpu.memory_space<vmem>>, %arg1: memref<9x32x64xf32, #tpu.memory_space<vmem>>, %arg2: memref<6x512xf32, #tpu.memory_space<vmem>>, %arg3: memref<64x512xf32, #tpu.memory_space<vmem>>, %arg4: memref<512x32xf32, #tpu.memory_space<vmem>>, %arg5: memref<1x32xf32, #tpu.memory_space<vmem>>, %arg6: memref<2x1xf32, #tpu.memory_space<vmem>>) attributes {dimension_semantics = [], scalar_prefetch = 0 : i64, scratch_operands = 0 : i64, tpu.core_type = #tpu.core_type<tc>} {
    %c0 = arith.constant 0 : index
    %c0_0 = arith.constant 0 : index
    %c0_1 = arith.constant 0 : index
    %0 = vector.load %arg1[%c0, %c0_0, %c0_1] : memref<9x32x64xf32, #tpu.memory_space<vmem>>, vector<1x8x32xf32>
    %1 = vector.shape_cast %0 : vector<1x8x32xf32> to vector<8x32xf32>
    %c1 = arith.constant 1 : index
    %c0_2 = arith.constant 0 : index
    %c0_3 = arith.constant 0 : index
    %2 = vector.load %arg1[%c1, %c0_2, %c0_3] : memref<9x32x64xf32, #tpu.memory_space<vmem>>, vector<1x8x32xf32>
    %3 = vector.shape_cast %2 : vector<1x8x32xf32> to vector<8x32xf32>
    %c2 = arith.constant 2 : index
    %c0_4 = arith.constant 0 : index
    %c0_5 = arith.constant 0 : index
    %4 = vector.load %arg1[%c2, %c0_4, %c0_5] : memref<9x32x64xf32, #tpu.memory_space<vmem>>, vector<1x8x32xf32>
    %5 = vector.shape_cast %4 : vector<1x8x32xf32> to vector<8x32xf32>
    %c0_6 = arith.constant 0 : index
    %c0_7 = arith.constant 0 : index
    %6 = vector.load %arg2[%c0_6, %c0_7] : memref<6x512xf32, #tpu.memory_space<vmem>>, vector<1x32xf32>
    %c3 = arith.constant 3 : index
    %c0_8 = arith.constant 0 : index
    %c0_9 = arith.constant 0 : index
    %7 = vector.load %arg1[%c3, %c0_8, %c0_9] : memref<9x32x64xf32, #tpu.memory_space<vmem>>, vector<1x24x48xf32>
    %8 = vector.shape_cast %7 : vector<1x24x48xf32> to vector<24x48xf32>
    %c4 = arith.constant 4 : index
    %c0_10 = arith.constant 0 : index
    %c0_11 = arith.constant 0 : index
    %9 = vector.load %arg1[%c4, %c0_10, %c0_11] : memref<9x32x64xf32, #tpu.memory_space<vmem>>, vector<1x24x48xf32>
    %10 = vector.shape_cast %9 : vector<1x24x48xf32> to vector<24x48xf32>
    %c5 = arith.constant 5 : index
    %c0_12 = arith.constant 0 : index
    %c0_13 = arith.constant 0 : index
    %11 = vector.load %arg1[%c5, %c0_12, %c0_13] : memref<9x32x64xf32, #tpu.memory_space<vmem>>, vector<1x24x48xf32>
    %12 = vector.shape_cast %11 : vector<1x24x48xf32> to vector<24x48xf32>
    %c1_14 = arith.constant 1 : index
    %c0_15 = arith.constant 0 : index
    %13 = vector.load %arg2[%c1_14, %c0_15] : memref<6x512xf32, #tpu.memory_space<vmem>>, vector<1x48xf32>
    %c6 = arith.constant 6 : index
    %c0_16 = arith.constant 0 : index
    %c0_17 = arith.constant 0 : index
    %14 = vector.load %arg1[%c6, %c0_16, %c0_17] : memref<9x32x64xf32, #tpu.memory_space<vmem>>, vector<1x32x64xf32>
    %15 = vector.shape_cast %14 : vector<1x32x64xf32> to vector<32x64xf32>
    %c7 = arith.constant 7 : index
    %c0_18 = arith.constant 0 : index
    %c0_19 = arith.constant 0 : index
    %16 = vector.load %arg1[%c7, %c0_18, %c0_19] : memref<9x32x64xf32, #tpu.memory_space<vmem>>, vector<1x32x64xf32>
    %17 = vector.shape_cast %16 : vector<1x32x64xf32> to vector<32x64xf32>
    %c8 = arith.constant 8 : index
    %c0_20 = arith.constant 0 : index
    %c0_21 = arith.constant 0 : index
    %18 = vector.load %arg1[%c8, %c0_20, %c0_21] : memref<9x32x64xf32, #tpu.memory_space<vmem>>, vector<1x32x64xf32>
    %19 = vector.shape_cast %18 : vector<1x32x64xf32> to vector<32x64xf32>
    %c2_22 = arith.constant 2 : index
    %c0_23 = arith.constant 0 : index
    %20 = vector.load %arg2[%c2_22, %c0_23] : memref<6x512xf32, #tpu.memory_space<vmem>>, vector<1x64xf32>
    %c3_24 = arith.constant 3 : index
    %c0_25 = arith.constant 0 : index
    %21 = vector.load %arg2[%c3_24, %c0_25] : memref<6x512xf32, #tpu.memory_space<vmem>>, vector<1x512xf32>
    %c4_26 = arith.constant 4 : index
    %c0_27 = arith.constant 0 : index
    %22 = vector.load %arg2[%c4_26, %c0_27] : memref<6x512xf32, #tpu.memory_space<vmem>>, vector<1x32xf32>
    %c5_28 = arith.constant 5 : index
    %c0_29 = arith.constant 0 : index
    %23 = vector.load %arg2[%c5_28, %c0_29] : memref<6x512xf32, #tpu.memory_space<vmem>>, vector<1x1xf32>
    %c0_30 = arith.constant 0 : index
    %c0_31 = arith.constant 0 : index
    %c0_32 = arith.constant 0 : index
    %24 = vector.load %arg0[%c0_30, %c0_31, %c0_32] : memref<2x8x8xf32, #tpu.memory_space<vmem>>, vector<1x8x8xf32>
    %25 = vector.shape_cast %24 : vector<1x8x8xf32> to vector<8x8xf32>
    %cst = arith.constant 0.000000e+00 : f32
    %26 = vector.broadcast %cst : f32 to vector<1x8xf32>
    %27 = vector.extract_strided_slice %25 {offsets = [0, 0], sizes = [7, 8], strides = [1, 1]} : vector<8x8xf32> to vector<7x8xf32>
    %28 = tpu.concatenate %26, %27 in 0 : vector<1x8xf32>, vector<7x8xf32> -> vector<8x8xf32>
    %29 = vector.extract_strided_slice %25 {offsets = [1, 0], sizes = [7, 8], strides = [1, 1]} : vector<8x8xf32> to vector<7x8xf32>
    %30 = tpu.concatenate %29, %26 in 0 : vector<7x8xf32>, vector<1x8xf32> -> vector<8x8xf32>
    %cst_33 = arith.constant dense<0.000000e+00> : vector<8x32xf32>
    %31 = tpu.matmul %28, %1, %cst_33 {dimension_numbers = #tpu.dot_dimension_numbers<[1], [0], [0], [1], [0, 0, 1, 1], [], []>} : vector<8x8xf32>, vector<8x32xf32>, vector<8x32xf32> -> vector<8x32xf32>
    %cst_34 = arith.constant dense<0.000000e+00> : vector<8x32xf32>
    %32 = tpu.matmul %25, %3, %cst_34 {dimension_numbers = #tpu.dot_dimension_numbers<[1], [0], [0], [1], [0, 0, 1, 1], [], []>} : vector<8x8xf32>, vector<8x32xf32>, vector<8x32xf32> -> vector<8x32xf32>
    %33 = arith.addf %31, %32 : vector<8x32xf32>
    %cst_35 = arith.constant dense<0.000000e+00> : vector<8x32xf32>
    %34 = tpu.matmul %30, %5, %cst_35 {dimension_numbers = #tpu.dot_dimension_numbers<[1], [0], [0], [1], [0, 0, 1, 1], [], []>} : vector<8x8xf32>, vector<8x32xf32>, vector<8x32xf32> -> vector<8x32xf32>
    %35 = arith.addf %33, %34 : vector<8x32xf32>
    %36 = vector.broadcast %6 : vector<1x32xf32> to vector<8x32xf32>
    %37 = arith.addf %35, %36 : vector<8x32xf32>
    %cst_36 = arith.constant 0.000000e+00 : f32
    %38 = vector.broadcast %cst_36 : f32 to vector<8x32xf32>
    %39 = arith.maximumf %37, %38 : vector<8x32xf32>
    %40 = vector.extract_strided_slice %39 {offsets = [0, 0], sizes = [6, 24], strides = [1, 1]} : vector<8x32xf32> to vector<6x24xf32>
    %41 = vector.extract_strided_slice %39 {offsets = [0, 4], sizes = [6, 24], strides = [1, 1]} : vector<8x32xf32> to vector<6x24xf32>
    %42 = arith.maximumf %40, %41 : vector<6x24xf32>
    %43 = vector.extract_strided_slice %39 {offsets = [0, 8], sizes = [6, 24], strides = [1, 1]} : vector<8x32xf32> to vector<6x24xf32>
    %44 = arith.maximumf %42, %43 : vector<6x24xf32>
    %45 = vector.extract_strided_slice %39 {offsets = [1, 0], sizes = [6, 24], strides = [1, 1]} : vector<8x32xf32> to vector<6x24xf32>
    %46 = arith.maximumf %44, %45 : vector<6x24xf32>
    %47 = vector.extract_strided_slice %39 {offsets = [1, 4], sizes = [6, 24], strides = [1, 1]} : vector<8x32xf32> to vector<6x24xf32>
    %48 = arith.maximumf %46, %47 : vector<6x24xf32>
    %49 = vector.extract_strided_slice %39 {offsets = [1, 8], sizes = [6, 24], strides = [1, 1]} : vector<8x32xf32> to vector<6x24xf32>
    %50 = arith.maximumf %48, %49 : vector<6x24xf32>
    %51 = vector.extract_strided_slice %39 {offsets = [2, 0], sizes = [6, 24], strides = [1, 1]} : vector<8x32xf32> to vector<6x24xf32>
    %52 = arith.maximumf %50, %51 : vector<6x24xf32>
    %53 = vector.extract_strided_slice %39 {offsets = [2, 4], sizes = [6, 24], strides = [1, 1]} : vector<8x32xf32> to vector<6x24xf32>
    %54 = arith.maximumf %52, %53 : vector<6x24xf32>
    %55 = vector.extract_strided_slice %39 {offsets = [2, 8], sizes = [6, 24], strides = [1, 1]} : vector<8x32xf32> to vector<6x24xf32>
    %56 = arith.maximumf %54, %55 : vector<6x24xf32>
    %cst_37 = arith.constant 0.000000e+00 : f32
    %57 = vector.broadcast %cst_37 : f32 to vector<1x24xf32>
    %58 = vector.extract_strided_slice %56 {offsets = [0, 0], sizes = [5, 24], strides = [1, 1]} : vector<6x24xf32> to vector<5x24xf32>
    %59 = tpu.concatenate %57, %58 in 0 : vector<1x24xf32>, vector<5x24xf32> -> vector<6x24xf32>
    %60 = vector.extract_strided_slice %56 {offsets = [1, 0], sizes = [5, 24], strides = [1, 1]} : vector<6x24xf32> to vector<5x24xf32>
    %61 = tpu.concatenate %60, %57 in 0 : vector<5x24xf32>, vector<1x24xf32> -> vector<6x24xf32>
    %cst_38 = arith.constant dense<0.000000e+00> : vector<6x48xf32>
    %62 = tpu.matmul %59, %8, %cst_38 {dimension_numbers = #tpu.dot_dimension_numbers<[1], [0], [0], [1], [0, 0, 1, 1], [], []>} : vector<6x24xf32>, vector<24x48xf32>, vector<6x48xf32> -> vector<6x48xf32>
    %cst_39 = arith.constant dense<0.000000e+00> : vector<6x48xf32>
    %63 = tpu.matmul %56, %10, %cst_39 {dimension_numbers = #tpu.dot_dimension_numbers<[1], [0], [0], [1], [0, 0, 1, 1], [], []>} : vector<6x24xf32>, vector<24x48xf32>, vector<6x48xf32> -> vector<6x48xf32>
    %64 = arith.addf %62, %63 : vector<6x48xf32>
    %cst_40 = arith.constant dense<0.000000e+00> : vector<6x48xf32>
    %65 = tpu.matmul %61, %12, %cst_40 {dimension_numbers = #tpu.dot_dimension_numbers<[1], [0], [0], [1], [0, 0, 1, 1], [], []>} : vector<6x24xf32>, vector<24x48xf32>, vector<6x48xf32> -> vector<6x48xf32>
    %66 = arith.addf %64, %65 : vector<6x48xf32>
    %67 = vector.broadcast %13 : vector<1x48xf32> to vector<6x48xf32>
    %68 = arith.addf %66, %67 : vector<6x48xf32>
    %cst_41 = arith.constant 0.000000e+00 : f32
    %69 = vector.broadcast %cst_41 : f32 to vector<6x48xf32>
    %70 = arith.maximumf %68, %69 : vector<6x48xf32>
    %71 = vector.extract_strided_slice %70 {offsets = [0, 0], sizes = [4, 32], strides = [1, 1]} : vector<6x48xf32> to vector<4x32xf32>
    %72 = vector.extract_strided_slice %70 {offsets = [0, 8], sizes = [4, 32], strides = [1, 1]} : vector<6x48xf32> to vector<4x32xf32>
    %73 = arith.maximumf %71, %72 : vector<4x32xf32>
    %74 = vector.extract_strided_slice %70 {offsets = [0, 16], sizes = [4, 32], strides = [1, 1]} : vector<6x48xf32> to vector<4x32xf32>
    %75 = arith.maximumf %73, %74 : vector<4x32xf32>
    %76 = vector.extract_strided_slice %70 {offsets = [1, 0], sizes = [4, 32], strides = [1, 1]} : vector<6x48xf32> to vector<4x32xf32>
    %77 = arith.maximumf %75, %76 : vector<4x32xf32>
    %78 = vector.extract_strided_slice %70 {offsets = [1, 8], sizes = [4, 32], strides = [1, 1]} : vector<6x48xf32> to vector<4x32xf32>
    %79 = arith.maximumf %77, %78 : vector<4x32xf32>
    %80 = vector.extract_strided_slice %70 {offsets = [1, 16], sizes = [4, 32], strides = [1, 1]} : vector<6x48xf32> to vector<4x32xf32>
    %81 = arith.maximumf %79, %80 : vector<4x32xf32>
    %82 = vector.extract_strided_slice %70 {offsets = [2, 0], sizes = [4, 32], strides = [1, 1]} : vector<6x48xf32> to vector<4x32xf32>
    %83 = arith.maximumf %81, %82 : vector<4x32xf32>
    %84 = vector.extract_strided_slice %70 {offsets = [2, 8], sizes = [4, 32], strides = [1, 1]} : vector<6x48xf32> to vector<4x32xf32>
    %85 = arith.maximumf %83, %84 : vector<4x32xf32>
    %86 = vector.extract_strided_slice %70 {offsets = [2, 16], sizes = [4, 32], strides = [1, 1]} : vector<6x48xf32> to vector<4x32xf32>
    %87 = arith.maximumf %85, %86 : vector<4x32xf32>
    %cst_42 = arith.constant 0.000000e+00 : f32
    %88 = vector.broadcast %cst_42 : f32 to vector<1x32xf32>
    %89 = vector.extract_strided_slice %87 {offsets = [0, 0], sizes = [3, 32], strides = [1, 1]} : vector<4x32xf32> to vector<3x32xf32>
    %90 = tpu.concatenate %88, %89 in 0 : vector<1x32xf32>, vector<3x32xf32> -> vector<4x32xf32>
    %91 = vector.extract_strided_slice %87 {offsets = [1, 0], sizes = [3, 32], strides = [1, 1]} : vector<4x32xf32> to vector<3x32xf32>
    %92 = tpu.concatenate %91, %88 in 0 : vector<3x32xf32>, vector<1x32xf32> -> vector<4x32xf32>
    %cst_43 = arith.constant dense<0.000000e+00> : vector<4x64xf32>
    %93 = tpu.matmul %90, %15, %cst_43 {dimension_numbers = #tpu.dot_dimension_numbers<[1], [0], [0], [1], [0, 0, 1, 1], [], []>} : vector<4x32xf32>, vector<32x64xf32>, vector<4x64xf32> -> vector<4x64xf32>
    %cst_44 = arith.constant dense<0.000000e+00> : vector<4x64xf32>
    %94 = tpu.matmul %87, %17, %cst_44 {dimension_numbers = #tpu.dot_dimension_numbers<[1], [0], [0], [1], [0, 0, 1, 1], [], []>} : vector<4x32xf32>, vector<32x64xf32>, vector<4x64xf32> -> vector<4x64xf32>
    %95 = arith.addf %93, %94 : vector<4x64xf32>
    %cst_45 = arith.constant dense<0.000000e+00> : vector<4x64xf32>
    %96 = tpu.matmul %92, %19, %cst_45 {dimension_numbers = #tpu.dot_dimension_numbers<[1], [0], [0], [1], [0, 0, 1, 1], [], []>} : vector<4x32xf32>, vector<32x64xf32>, vector<4x64xf32> -> vector<4x64xf32>
    %97 = arith.addf %95, %96 : vector<4x64xf32>
    %98 = vector.broadcast %20 : vector<1x64xf32> to vector<4x64xf32>
    %99 = arith.addf %97, %98 : vector<4x64xf32>
    %cst_46 = arith.constant 0.000000e+00 : f32
    %100 = vector.broadcast %cst_46 : f32 to vector<4x64xf32>
    %101 = arith.maximumf %99, %100 : vector<4x64xf32>
    %102 = vector.extract_strided_slice %101 {offsets = [0, 0], sizes = [2, 32], strides = [1, 1]} : vector<4x64xf32> to vector<2x32xf32>
    %103 = vector.extract_strided_slice %101 {offsets = [0, 16], sizes = [2, 32], strides = [1, 1]} : vector<4x64xf32> to vector<2x32xf32>
    %104 = arith.maximumf %102, %103 : vector<2x32xf32>
    %105 = vector.extract_strided_slice %101 {offsets = [0, 32], sizes = [2, 32], strides = [1, 1]} : vector<4x64xf32> to vector<2x32xf32>
    %106 = arith.maximumf %104, %105 : vector<2x32xf32>
    %107 = vector.extract_strided_slice %101 {offsets = [1, 0], sizes = [2, 32], strides = [1, 1]} : vector<4x64xf32> to vector<2x32xf32>
    %108 = arith.maximumf %106, %107 : vector<2x32xf32>
    %109 = vector.extract_strided_slice %101 {offsets = [1, 16], sizes = [2, 32], strides = [1, 1]} : vector<4x64xf32> to vector<2x32xf32>
    %110 = arith.maximumf %108, %109 : vector<2x32xf32>
    %111 = vector.extract_strided_slice %101 {offsets = [1, 32], sizes = [2, 32], strides = [1, 1]} : vector<4x64xf32> to vector<2x32xf32>
    %112 = arith.maximumf %110, %111 : vector<2x32xf32>
    %113 = vector.extract_strided_slice %101 {offsets = [2, 0], sizes = [2, 32], strides = [1, 1]} : vector<4x64xf32> to vector<2x32xf32>
    %114 = arith.maximumf %112, %113 : vector<2x32xf32>
    %115 = vector.extract_strided_slice %101 {offsets = [2, 16], sizes = [2, 32], strides = [1, 1]} : vector<4x64xf32> to vector<2x32xf32>
    %116 = arith.maximumf %114, %115 : vector<2x32xf32>
    %117 = vector.extract_strided_slice %101 {offsets = [2, 32], sizes = [2, 32], strides = [1, 1]} : vector<4x64xf32> to vector<2x32xf32>
    %118 = arith.maximumf %116, %117 : vector<2x32xf32>
    %119 = vector.extract_strided_slice %118 {offsets = [0, 0], sizes = [1, 32], strides = [1, 1]} : vector<2x32xf32> to vector<1x32xf32>
    %120 = vector.extract_strided_slice %118 {offsets = [1, 0], sizes = [1, 32], strides = [1, 1]} : vector<2x32xf32> to vector<1x32xf32>
    %121 = tpu.concatenate %119, %120 in 1 : vector<1x32xf32>, vector<1x32xf32> -> vector<1x64xf32>
    %c1_47 = arith.constant 1 : index
    %c0_48 = arith.constant 0 : index
    %c0_49 = arith.constant 0 : index
    %122 = vector.load %arg0[%c1_47, %c0_48, %c0_49] : memref<2x8x8xf32, #tpu.memory_space<vmem>>, vector<1x8x8xf32>
    %123 = vector.shape_cast %122 : vector<1x8x8xf32> to vector<8x8xf32>
    %cst_50 = arith.constant 0.000000e+00 : f32
    %124 = vector.broadcast %cst_50 : f32 to vector<1x8xf32>
    %125 = vector.extract_strided_slice %123 {offsets = [0, 0], sizes = [7, 8], strides = [1, 1]} : vector<8x8xf32> to vector<7x8xf32>
    %126 = tpu.concatenate %124, %125 in 0 : vector<1x8xf32>, vector<7x8xf32> -> vector<8x8xf32>
    %127 = vector.extract_strided_slice %123 {offsets = [1, 0], sizes = [7, 8], strides = [1, 1]} : vector<8x8xf32> to vector<7x8xf32>
    %128 = tpu.concatenate %127, %124 in 0 : vector<7x8xf32>, vector<1x8xf32> -> vector<8x8xf32>
    %cst_51 = arith.constant dense<0.000000e+00> : vector<8x32xf32>
    %129 = tpu.matmul %126, %1, %cst_51 {dimension_numbers = #tpu.dot_dimension_numbers<[1], [0], [0], [1], [0, 0, 1, 1], [], []>} : vector<8x8xf32>, vector<8x32xf32>, vector<8x32xf32> -> vector<8x32xf32>
    %cst_52 = arith.constant dense<0.000000e+00> : vector<8x32xf32>
    %130 = tpu.matmul %123, %3, %cst_52 {dimension_numbers = #tpu.dot_dimension_numbers<[1], [0], [0], [1], [0, 0, 1, 1], [], []>} : vector<8x8xf32>, vector<8x32xf32>, vector<8x32xf32> -> vector<8x32xf32>
    %131 = arith.addf %129, %130 : vector<8x32xf32>
    %cst_53 = arith.constant dense<0.000000e+00> : vector<8x32xf32>
    %132 = tpu.matmul %128, %5, %cst_53 {dimension_numbers = #tpu.dot_dimension_numbers<[1], [0], [0], [1], [0, 0, 1, 1], [], []>} : vector<8x8xf32>, vector<8x32xf32>, vector<8x32xf32> -> vector<8x32xf32>
    %133 = arith.addf %131, %132 : vector<8x32xf32>
    %134 = vector.broadcast %6 : vector<1x32xf32> to vector<8x32xf32>
    %135 = arith.addf %133, %134 : vector<8x32xf32>
    %cst_54 = arith.constant 0.000000e+00 : f32
    %136 = vector.broadcast %cst_54 : f32 to vector<8x32xf32>
    %137 = arith.maximumf %135, %136 : vector<8x32xf32>
    %138 = vector.extract_strided_slice %137 {offsets = [0, 0], sizes = [6, 24], strides = [1, 1]} : vector<8x32xf32> to vector<6x24xf32>
    %139 = vector.extract_strided_slice %137 {offsets = [0, 4], sizes = [6, 24], strides = [1, 1]} : vector<8x32xf32> to vector<6x24xf32>
    %140 = arith.maximumf %138, %139 : vector<6x24xf32>
    %141 = vector.extract_strided_slice %137 {offsets = [0, 8], sizes = [6, 24], strides = [1, 1]} : vector<8x32xf32> to vector<6x24xf32>
    %142 = arith.maximumf %140, %141 : vector<6x24xf32>
    %143 = vector.extract_strided_slice %137 {offsets = [1, 0], sizes = [6, 24], strides = [1, 1]} : vector<8x32xf32> to vector<6x24xf32>
    %144 = arith.maximumf %142, %143 : vector<6x24xf32>
    %145 = vector.extract_strided_slice %137 {offsets = [1, 4], sizes = [6, 24], strides = [1, 1]} : vector<8x32xf32> to vector<6x24xf32>
    %146 = arith.maximumf %144, %145 : vector<6x24xf32>
    %147 = vector.extract_strided_slice %137 {offsets = [1, 8], sizes = [6, 24], strides = [1, 1]} : vector<8x32xf32> to vector<6x24xf32>
    %148 = arith.maximumf %146, %147 : vector<6x24xf32>
    %149 = vector.extract_strided_slice %137 {offsets = [2, 0], sizes = [6, 24], strides = [1, 1]} : vector<8x32xf32> to vector<6x24xf32>
    %150 = arith.maximumf %148, %149 : vector<6x24xf32>
    %151 = vector.extract_strided_slice %137 {offsets = [2, 4], sizes = [6, 24], strides = [1, 1]} : vector<8x32xf32> to vector<6x24xf32>
    %152 = arith.maximumf %150, %151 : vector<6x24xf32>
    %153 = vector.extract_strided_slice %137 {offsets = [2, 8], sizes = [6, 24], strides = [1, 1]} : vector<8x32xf32> to vector<6x24xf32>
    %154 = arith.maximumf %152, %153 : vector<6x24xf32>
    %cst_55 = arith.constant 0.000000e+00 : f32
    %155 = vector.broadcast %cst_55 : f32 to vector<1x24xf32>
    %156 = vector.extract_strided_slice %154 {offsets = [0, 0], sizes = [5, 24], strides = [1, 1]} : vector<6x24xf32> to vector<5x24xf32>
    %157 = tpu.concatenate %155, %156 in 0 : vector<1x24xf32>, vector<5x24xf32> -> vector<6x24xf32>
    %158 = vector.extract_strided_slice %154 {offsets = [1, 0], sizes = [5, 24], strides = [1, 1]} : vector<6x24xf32> to vector<5x24xf32>
    %159 = tpu.concatenate %158, %155 in 0 : vector<5x24xf32>, vector<1x24xf32> -> vector<6x24xf32>
    %cst_56 = arith.constant dense<0.000000e+00> : vector<6x48xf32>
    %160 = tpu.matmul %157, %8, %cst_56 {dimension_numbers = #tpu.dot_dimension_numbers<[1], [0], [0], [1], [0, 0, 1, 1], [], []>} : vector<6x24xf32>, vector<24x48xf32>, vector<6x48xf32> -> vector<6x48xf32>
    %cst_57 = arith.constant dense<0.000000e+00> : vector<6x48xf32>
    %161 = tpu.matmul %154, %10, %cst_57 {dimension_numbers = #tpu.dot_dimension_numbers<[1], [0], [0], [1], [0, 0, 1, 1], [], []>} : vector<6x24xf32>, vector<24x48xf32>, vector<6x48xf32> -> vector<6x48xf32>
    %162 = arith.addf %160, %161 : vector<6x48xf32>
    %cst_58 = arith.constant dense<0.000000e+00> : vector<6x48xf32>
    %163 = tpu.matmul %159, %12, %cst_58 {dimension_numbers = #tpu.dot_dimension_numbers<[1], [0], [0], [1], [0, 0, 1, 1], [], []>} : vector<6x24xf32>, vector<24x48xf32>, vector<6x48xf32> -> vector<6x48xf32>
    %164 = arith.addf %162, %163 : vector<6x48xf32>
    %165 = vector.broadcast %13 : vector<1x48xf32> to vector<6x48xf32>
    %166 = arith.addf %164, %165 : vector<6x48xf32>
    %cst_59 = arith.constant 0.000000e+00 : f32
    %167 = vector.broadcast %cst_59 : f32 to vector<6x48xf32>
    %168 = arith.maximumf %166, %167 : vector<6x48xf32>
    %169 = vector.extract_strided_slice %168 {offsets = [0, 0], sizes = [4, 32], strides = [1, 1]} : vector<6x48xf32> to vector<4x32xf32>
    %170 = vector.extract_strided_slice %168 {offsets = [0, 8], sizes = [4, 32], strides = [1, 1]} : vector<6x48xf32> to vector<4x32xf32>
    %171 = arith.maximumf %169, %170 : vector<4x32xf32>
    %172 = vector.extract_strided_slice %168 {offsets = [0, 16], sizes = [4, 32], strides = [1, 1]} : vector<6x48xf32> to vector<4x32xf32>
    %173 = arith.maximumf %171, %172 : vector<4x32xf32>
    %174 = vector.extract_strided_slice %168 {offsets = [1, 0], sizes = [4, 32], strides = [1, 1]} : vector<6x48xf32> to vector<4x32xf32>
    %175 = arith.maximumf %173, %174 : vector<4x32xf32>
    %176 = vector.extract_strided_slice %168 {offsets = [1, 8], sizes = [4, 32], strides = [1, 1]} : vector<6x48xf32> to vector<4x32xf32>
    %177 = arith.maximumf %175, %176 : vector<4x32xf32>
    %178 = vector.extract_strided_slice %168 {offsets = [1, 16], sizes = [4, 32], strides = [1, 1]} : vector<6x48xf32> to vector<4x32xf32>
    %179 = arith.maximumf %177, %178 : vector<4x32xf32>
    %180 = vector.extract_strided_slice %168 {offsets = [2, 0], sizes = [4, 32], strides = [1, 1]} : vector<6x48xf32> to vector<4x32xf32>
    %181 = arith.maximumf %179, %180 : vector<4x32xf32>
    %182 = vector.extract_strided_slice %168 {offsets = [2, 8], sizes = [4, 32], strides = [1, 1]} : vector<6x48xf32> to vector<4x32xf32>
    %183 = arith.maximumf %181, %182 : vector<4x32xf32>
    %184 = vector.extract_strided_slice %168 {offsets = [2, 16], sizes = [4, 32], strides = [1, 1]} : vector<6x48xf32> to vector<4x32xf32>
    %185 = arith.maximumf %183, %184 : vector<4x32xf32>
    %cst_60 = arith.constant 0.000000e+00 : f32
    %186 = vector.broadcast %cst_60 : f32 to vector<1x32xf32>
    %187 = vector.extract_strided_slice %185 {offsets = [0, 0], sizes = [3, 32], strides = [1, 1]} : vector<4x32xf32> to vector<3x32xf32>
    %188 = tpu.concatenate %186, %187 in 0 : vector<1x32xf32>, vector<3x32xf32> -> vector<4x32xf32>
    %189 = vector.extract_strided_slice %185 {offsets = [1, 0], sizes = [3, 32], strides = [1, 1]} : vector<4x32xf32> to vector<3x32xf32>
    %190 = tpu.concatenate %189, %186 in 0 : vector<3x32xf32>, vector<1x32xf32> -> vector<4x32xf32>
    %cst_61 = arith.constant dense<0.000000e+00> : vector<4x64xf32>
    %191 = tpu.matmul %188, %15, %cst_61 {dimension_numbers = #tpu.dot_dimension_numbers<[1], [0], [0], [1], [0, 0, 1, 1], [], []>} : vector<4x32xf32>, vector<32x64xf32>, vector<4x64xf32> -> vector<4x64xf32>
    %cst_62 = arith.constant dense<0.000000e+00> : vector<4x64xf32>
    %192 = tpu.matmul %185, %17, %cst_62 {dimension_numbers = #tpu.dot_dimension_numbers<[1], [0], [0], [1], [0, 0, 1, 1], [], []>} : vector<4x32xf32>, vector<32x64xf32>, vector<4x64xf32> -> vector<4x64xf32>
    %193 = arith.addf %191, %192 : vector<4x64xf32>
    %cst_63 = arith.constant dense<0.000000e+00> : vector<4x64xf32>
    %194 = tpu.matmul %190, %19, %cst_63 {dimension_numbers = #tpu.dot_dimension_numbers<[1], [0], [0], [1], [0, 0, 1, 1], [], []>} : vector<4x32xf32>, vector<32x64xf32>, vector<4x64xf32> -> vector<4x64xf32>
    %195 = arith.addf %193, %194 : vector<4x64xf32>
    %196 = vector.broadcast %20 : vector<1x64xf32> to vector<4x64xf32>
    %197 = arith.addf %195, %196 : vector<4x64xf32>
    %cst_64 = arith.constant 0.000000e+00 : f32
    %198 = vector.broadcast %cst_64 : f32 to vector<4x64xf32>
    %199 = arith.maximumf %197, %198 : vector<4x64xf32>
    %200 = vector.extract_strided_slice %199 {offsets = [0, 0], sizes = [2, 32], strides = [1, 1]} : vector<4x64xf32> to vector<2x32xf32>
    %201 = vector.extract_strided_slice %199 {offsets = [0, 16], sizes = [2, 32], strides = [1, 1]} : vector<4x64xf32> to vector<2x32xf32>
    %202 = arith.maximumf %200, %201 : vector<2x32xf32>
    %203 = vector.extract_strided_slice %199 {offsets = [0, 32], sizes = [2, 32], strides = [1, 1]} : vector<4x64xf32> to vector<2x32xf32>
    %204 = arith.maximumf %202, %203 : vector<2x32xf32>
    %205 = vector.extract_strided_slice %199 {offsets = [1, 0], sizes = [2, 32], strides = [1, 1]} : vector<4x64xf32> to vector<2x32xf32>
    %206 = arith.maximumf %204, %205 : vector<2x32xf32>
    %207 = vector.extract_strided_slice %199 {offsets = [1, 16], sizes = [2, 32], strides = [1, 1]} : vector<4x64xf32> to vector<2x32xf32>
    %208 = arith.maximumf %206, %207 : vector<2x32xf32>
    %209 = vector.extract_strided_slice %199 {offsets = [1, 32], sizes = [2, 32], strides = [1, 1]} : vector<4x64xf32> to vector<2x32xf32>
    %210 = arith.maximumf %208, %209 : vector<2x32xf32>
    %211 = vector.extract_strided_slice %199 {offsets = [2, 0], sizes = [2, 32], strides = [1, 1]} : vector<4x64xf32> to vector<2x32xf32>
    %212 = arith.maximumf %210, %211 : vector<2x32xf32>
    %213 = vector.extract_strided_slice %199 {offsets = [2, 16], sizes = [2, 32], strides = [1, 1]} : vector<4x64xf32> to vector<2x32xf32>
    %214 = arith.maximumf %212, %213 : vector<2x32xf32>
    %215 = vector.extract_strided_slice %199 {offsets = [2, 32], sizes = [2, 32], strides = [1, 1]} : vector<4x64xf32> to vector<2x32xf32>
    %216 = arith.maximumf %214, %215 : vector<2x32xf32>
    %217 = vector.extract_strided_slice %216 {offsets = [0, 0], sizes = [1, 32], strides = [1, 1]} : vector<2x32xf32> to vector<1x32xf32>
    %218 = vector.extract_strided_slice %216 {offsets = [1, 0], sizes = [1, 32], strides = [1, 1]} : vector<2x32xf32> to vector<1x32xf32>
    %219 = tpu.concatenate %217, %218 in 1 : vector<1x32xf32>, vector<1x32xf32> -> vector<1x64xf32>
    %220 = tpu.concatenate %121, %219 in 0 : vector<1x64xf32>, vector<1x64xf32> -> vector<2x64xf32>
    %c0_65 = arith.constant 0 : index
    %c0_66 = arith.constant 0 : index
    %221 = vector.load %arg3[%c0_65, %c0_66] : memref<64x512xf32, #tpu.memory_space<vmem>>, vector<64x512xf32>
    %cst_67 = arith.constant dense<0.000000e+00> : vector<2x512xf32>
    %222 = tpu.matmul %220, %221, %cst_67 {dimension_numbers = #tpu.dot_dimension_numbers<[1], [0], [0], [1], [0, 0, 1, 1], [], []>} : vector<2x64xf32>, vector<64x512xf32>, vector<2x512xf32> -> vector<2x512xf32>
    %223 = vector.broadcast %21 : vector<1x512xf32> to vector<2x512xf32>
    %224 = arith.addf %222, %223 : vector<2x512xf32>
    %cst_68 = arith.constant 0.000000e+00 : f32
    %225 = vector.broadcast %cst_68 : f32 to vector<2x512xf32>
    %226 = arith.maximumf %224, %225 : vector<2x512xf32>
    %c0_69 = arith.constant 0 : index
    %c0_70 = arith.constant 0 : index
    %227 = vector.load %arg4[%c0_69, %c0_70] : memref<512x32xf32, #tpu.memory_space<vmem>>, vector<512x32xf32>
    %cst_71 = arith.constant dense<0.000000e+00> : vector<2x32xf32>
    %228 = tpu.matmul %226, %227, %cst_71 {dimension_numbers = #tpu.dot_dimension_numbers<[1], [0], [0], [1], [0, 0, 1, 1], [], []>} : vector<2x512xf32>, vector<512x32xf32>, vector<2x32xf32> -> vector<2x32xf32>
    %229 = vector.broadcast %22 : vector<1x32xf32> to vector<2x32xf32>
    %230 = arith.addf %228, %229 : vector<2x32xf32>
    %cst_72 = arith.constant 0.000000e+00 : f32
    %231 = vector.broadcast %cst_72 : f32 to vector<2x32xf32>
    %232 = arith.maximumf %230, %231 : vector<2x32xf32>
    %c0_73 = arith.constant 0 : index
    %c0_74 = arith.constant 0 : index
    %233 = vector.load %arg5[%c0_73, %c0_74] : memref<1x32xf32, #tpu.memory_space<vmem>>, vector<1x32xf32>
    %234 = vector.broadcast %233 : vector<1x32xf32> to vector<2x32xf32>
    %235 = arith.mulf %232, %234 : vector<2x32xf32>
    %cst_75 = arith.constant dense<0.000000e+00> : vector<2xf32>
    %236 = vector.multi_reduction <add>, %235, %cst_75 [1] : vector<2x32xf32> to vector<2xf32>
    %237 = vector.shape_cast %236 : vector<2xf32> to vector<2x1xf32>
    %238 = vector.broadcast %23 : vector<1x1xf32> to vector<2x1xf32>
    %239 = arith.addf %237, %238 : vector<2x1xf32>
    %cst_76 = arith.constant 5.000000e-01 : f32
    %240 = vector.broadcast %cst_76 : f32 to vector<2x1xf32>
    %241 = arith.mulf %240, %239 : vector<2x1xf32>
    %242 = math.tanh %241 : vector<2x1xf32>
    %cst_77 = arith.constant 1.000000e+00 : f32
    %243 = vector.broadcast %cst_77 : f32 to vector<2x1xf32>
    %244 = arith.addf %242, %243 : vector<2x1xf32>
    %cst_78 = arith.constant 5.000000e-01 : f32
    %245 = vector.broadcast %cst_78 : f32 to vector<2x1xf32>
    %246 = arith.mulf %245, %244 : vector<2x1xf32>
    %c0_79 = arith.constant 0 : index
    %c0_80 = arith.constant 0 : index
    %247 = vector.load %arg6[%c0_79, %c0_80] : memref<2x1xf32, #tpu.memory_space<vmem>>, vector<2x1xf32>
    tpu.vector_store %arg6[%c0_79, %c0_80], %246 {strides = array<i32>} : memref<2x1xf32, #tpu.memory_space<vmem>>, vector<2x1xf32>,
    return
  }
}

</mosaic_0001>

<bundles_post_ra>
// kernel: convnet_forward.1
= control target key start
LH: loop header
LB: loop body
LE: loop exit
PB: predicated region body
PF: predicated region fallthrough
CT: control target
= control target key end

     0   :  { %vm72_vm0 = vcmask 64512   ;;  %v2565_v0 = vmov 0.0   ;;  %vm2566_vm1 = vmmov 0   ;;  %vm66_vm2 = vcmask 1040384   ;;  %s2568_s11 = smov 124   ;;  %s2569_s18 = smov 120   ;;  %s3228_s1 = inlined_call_operand.vmem [shape: f32[9,32,64], index: 1, kind: input, shape index: {}]   ;;  %s3229_s0 = inlined_call_operand.vmem [shape: f32[2,8,8], index: 0, kind: input, shape index: {}]   ;;  %s3230_s2 = inlined_call_operand.vmem [shape: f32[6,512], index: 2, kind: input, shape index: {}]   ;;  %s3231_s3 = inlined_call_operand.vmem [shape: f32[64,512], index: 3, kind: input, shape index: {}]   ;;  %s3232_s4 = inlined_call_operand.vmem [shape: f32[512,32], index: 4, kind: input, shape index: {}]   ;;  %s3233_s5 = inlined_call_operand.vmem [shape: f32[1,32], index: 5, kind: input, shape index: {}]   ;;  %s3234_s6 = inlined_call_operand.vmem [shape: f32[2,1], index: 6, kind: output, shape index: {}]  }
   0x1   :  { %2255 = vmatprep.subr.mxu0 %v2565_v0  ;;  %v2612_v1 = vld [vmem:[%s3228_s1 + $0x20] sm:$0xff]  ;;  %2257 = vmatprep.mubr.msk.f32.mxu0 %vm2566_vm1, %v2565_v0  ;;  %vm70_vm3 = vcmask 1046528   ;;  %v2079_v20 = vld [vmem:[%s3228_s1 + $0x88] sm:$0xff]  ;;  %v2567_v23 = vmov 0.0|0.0   ;;  %v2678_v28 = vld [vmem:[%s3228_s1 + $0x90] sm:$0xff]  ;;  %vm333_vm4 = vcmask 195584  }
   0x2   :  { %v62_v2 = vld [vmem:[%s3229_s0] sm:$0xff]  ;;  %2256 = vmatpush3.msra.mxu0 %v2612_v1  ;;  %2260 = vmatprep.subr.mxu1 %v2565_v0  ;;  %v2076_v26 = vld [vmem:[%s3228_s1 + $0x68] sm:$0xff]  ;;  %v2689_v30 = vld [vmem:[%s3228_s1 + $0x70] sm:$0xff]  ;;  %vm331_vm5 = vcmask 1044480   ;;  %s2570_s19 = smov 112   ;;  %vm594_vm6 = vcmask 261120  }
   0x3   :  { %v68_v3 = vrot.slane %v62_v2, 1  ;;  %v2624_v4 = vld [vmem:[%s3228_s1] sm:$0xff]  ;;  %v64_v6 = vrot.slane %v62_v2, 7  ;;  %2258 = vmatmul.mubr.msk.f32.vlgmr.msra.gmra.mrb[0].mxu0 %vm72_vm0, %v62_v2  ;;  %2265 = vmatprep.subr.mxu0 %v2565_v0  ;;  %v2082_v42 = vld [vmem:[%s3228_s1 + $0xa8] sm:$0xff]  ;;  %v2712_v51 = vld [vmem:[%s3228_s1 + $0xb0] sm:$0xff]  ;;  %vm592_vm7 = vcmask 1042432  }
   0x4   :  { %v2629_v5 = vld [vmem:[%s3228_s1 + $0x40] sm:$0xff]  ;;  %2261 = vmatpush3.msra.mxu1 %v2624_v4  ;;  %2262 = vmatprep.mubr.msk.f32.mxu1 %vm2566_vm1, %v2565_v0  ;;  %v2089_v59 = vld [vmem:[%s3228_s1 + $0xe8] sm:$0xff]  ;;  %vm1695_vm8 = vcmask 523264   ;;  %vm2058_vm9 = vcmask 254976   ;;  %vm2067_vm10 = vcmask 1024  }
   0x5   :  { %v67_v7 = vsel %vm66_vm2, 0.0, %v64_v6  ;;  %v71_v8 = vsel %vm70_vm3, %v68_v3, 0.0  ;;  %2266 = vmatpush3.msra.mxu0 %v2629_v5  ;;  %2267 = vmatprep.mubr.msk.f32.mxu0 %vm2566_vm1, %v2565_v0  ;;  %v2650_v14 = vld [vmem:[%s3230_s2] ss:$0 sm:$0xff]  ;;  %v2732_v60 = vld [vmem:[%s3230_s2 + $0x1] ss:$0 sm:$0xff] }
   0x6   :  { %2263 = vmatmul.mubr.msk.f32.vlgmr.msra.gmra.mrb[0].mxu1 %vm72_vm0, %v67_v7  ;;  %v2078_v19 = vld [vmem:[%s3228_s1 + $0x80] sm:$0xff]  ;;  %2405 = vmatprep.subr.bf16.mxu1 %v2567_v23  ;;  %v2090_v6 = vld [vmem:[%s3228_s1 + $0xf0] sm:$0xff]  ;;  %v2091_v7 = vld [vmem:[%s3228_s1 + $0xf8] sm:$0xff] }
   0x7   :  { %2276 = vmatprep.mubr.msk.f32.mxu1 %vm2566_vm1, %v2565_v0  ;;  %2268 = vmatmul.mubr.msk.f32.vlgmr.msra.gmra.mrb[2].mxu0 %vm72_vm0, %v71_v8  ;;  %v2659_v21 = vpack.c.bf16 %v2079_v20, %v2078_v19  ;;  %v2075_v25 = vld [vmem:[%s3228_s1 + $0x60] sm:$0xff] }
   0x8   :  { %2285 = vmatprep.mubr.msk.f32.mxu0 %vm2566_vm1, %v2565_v0  ;;  %2408 = vmatprep.subr.bf16.mxu0 %v2567_v23  ;;  %v2672_v27 = vpack.c.bf16 %v2076_v26, %v2075_v25  ;;  %v2081_v41 = vld [vmem:[%s3228_s1 + $0xa0] sm:$0xff] }
   0x9   :  { %2407 = vmatpush3.bf16.msra.mxu1 %v2659_v21  ;;  %v2701_v46 = vpack.c.bf16 %v2082_v42, %v2081_v41  ;;  %v2088_v58 = vld [vmem:[%s3228_s1 + $0xe0] sm:$0xff]  ;;  %v2094_v41 = vld [vmem:[%s3228_s1 + $0x110] sm:$0xff]  ;;  %v2095_v42 = vld [vmem:[%s3228_s1 + $0x118] sm:$0xff] }
   0xa   :  { %2274 = vmatprep.subr.mxu1 %v2565_v0  ;;  %2410 = vmatpush3.bf16.msra.mxu0 %v2672_v27  ;;  %v2734_v62 = vpack.c.bf16 %v2089_v59, %v2088_v58  ;;  %v2084_v8 = vld [vmem:[%s3228_s1 + $0xc0] sm:$0xff] }
   0xb   :  { %2283 = vmatprep.subr.mxu0 %v2565_v0 }
   0xd   :  { %2275 = vmatpush3.msra.mxu1 %v2678_v28 }
   0xe   :  { %2411 = vmatprep.subr.bf16.mxu1 %v2567_v23  ;;  %2284 = vmatpush3.msra.mxu0 %v2689_v30 }
   0xf   :  { %2414 = vmatprep.subr.bf16.mxu0 %v2567_v23 }
  0xd6   :  { %v141_v9 = vpop.f32.mrb[0].mxu0 }
  0xd7   :  { %v2259_v10 = vpop.f32.mrb[1].mxu0 }
  0xd8   :  { %v2085_v10 = vld [vmem:[%s3228_s1 + $0xc8] sm:$0xff] }
  0xd9   :  { %v214_v11 = vpop.f32.mrb[0].mxu1 }
  0xda   :  { %v215_v12 = vadd.f32 %v214_v11, %v141_v9  ;;  %v2264_v13 = vpop.f32.mrb[1].mxu1  ;;  %v287_v15 = vpop.f32.mrb[2].mxu0  ;;  %v2748_v9 = vpack.c.bf16 %v2091_v7, %v2090_v6 }
  0xdb   :  { %v2269_v17 = vpop.f32.mrb[3].mxu0  ;;  %v2086_v13 = vld [vmem:[%s3228_s1 + $0xd0] sm:$0xff] }
  0xdc   :  { %v291_v16 = vadd.f32 %v287_v15, %v215_v12  ;;  %v2753_v12 = vpack.c.bf16 %v2085_v10, %v2084_v8  ;;  %v2087_v15 = vld [vmem:[%s3228_s1 + $0xd8] sm:$0xff] }
  0xde   :  { %v292_v18 = vadd.f32 %v291_v16, %v2650_v14  ;;  %v2766_v16 = vpack.c.bf16 %v2087_v15, %v2086_v13 }
  0xe0   :  { %v293_v22 = vmax.f32 %v292_v18, 0.0 }
  0xe2   :  { %295 = vrot.lane.b32.xlu0 %v293_v22, %s2568_s11  ;;  %v303_v24 = vrot.slane %v293_v22, 1  ;;  %v314_v29 = vrot.slane %v293_v22, 2 }
  0xe4   :  { %306 = vrot.lane.b32.xlu1 %v303_v24, %s2568_s11 }
  0xe6   :  { %299 = vrot.lane.b32.xlu0 %v293_v22, %s2569_s18 }
  0xe8   :  { %310 = vrot.lane.b32.xlu1 %v303_v24, %s2569_s18 }
  0xea   :  { %317 = vrot.lane.b32.xlu0 %v314_v29, %s2568_s11 }
  0xec   :  { %321 = vrot.lane.b32.xlu1 %v314_v29, %s2569_s18 }
 0x154   :  { %v296_v31 = vpop.permute.xlu0 %295 }
 0x155   :  { %v298_v32 = vmax.f32 %v293_v22, %v296_v31 }
 0x156   :  { %v307_v33 = vpop.permute.xlu1 %306 }
 0x158   :  { %v300_v34 = vpop.permute.xlu0 %299 }
 0x159   :  { %v302_v35 = vmax.f32 %v298_v32, %v300_v34  ;;  %v2092_v34 = vld [vmem:[%s3228_s1 + $0x100] sm:$0xff] }
 0x15a   :  { %v311_v38 = vpop.permute.xlu1 %310 }
 0x15b   :  { %v305_v36 = vmax.f32 %v302_v35, %v303_v24  ;;  %v2093_v35 = vld [vmem:[%s3228_s1 + $0x108] sm:$0xff] }
 0x15c   :  { %v318_v43 = vpop.permute.xlu0 %317 }
 0x15d   :  { %v309_v37 = vmax.f32 %v305_v36, %v307_v33 }
 0x15e   :  { %v322_v45 = vpop.permute.xlu1 %321 }
 0x15f   :  { %v313_v39 = vmax.f32 %v309_v37, %v311_v38 }
 0x161   :  { %v316_v40 = vmax.f32 %v313_v39, %v314_v29  ;;  %v2781_v39 = vpack.c.bf16 %v2093_v35, %v2092_v34 }
 0x163   :  { %v320_v44 = vmax.f32 %v316_v40, %v318_v43 }
 0x165   :  { %v324_v47 = vmax.f32 %v320_v44, %v322_v45  ;;  %v2106_v44 = vld [vmem:[%s3229_s0 + $0x8] sm:$0xff]  ;;  %v2794_v45 = vpack.c.bf16 %v2095_v42, %v2094_v41 }
 0x167   :  { %v326_v48 = vrot.slane %v324_v47, 7  ;;  %2277 = vmatmul.mubr.msk.f32.vlgmr.msra.gmra.mrb[2].mxu1 %vm333_vm4, %v324_v47  ;;  %v329_v49 = vrot.slane %v324_v47, 1 }
 0x168   :  { %2413 = vmatpush3.bf16.msra.mxu1 %v2701_v46  ;;  %2294 = vmatprep.mubr.msk.f32.mxu1 %vm2566_vm1, %v2565_v0 }
 0x169   :  { %v328_v50 = vsel %vm66_vm2, 0.0, %v326_v48  ;;  %2292 = vmatprep.subr.mxu1 %v2565_v0  ;;  %v332_v52 = vsel %vm331_vm5, %v329_v49, 0.0  ;;  %v856_v49 = vrot.slane %v2106_v44, 7 }
 0x16a   :  { %2286 = vmatmul.mubr.msk.f32.vlgmr.msra.gmra.mrb[4].mxu0 %vm333_vm4, %v328_v50  ;;  %v859_v50 = vrot.slane %v2106_v44, 1 }
 0x16b   :  { %2305 = vmatprep.mubr.msk.f32.mxu0 %vm2566_vm1, %v2565_v0  ;;  %2416 = vmatpush3.bf16.msra.mxu0 %v2734_v62 }
 0x16c   :  { %2293 = vmatpush3.msra.mxu1 %v2712_v51  ;;  %2417 = vmatprep.subr.bf16.mxu0 %v2567_v23 }
 0x16d   :  { %2295 = vmatmul.mubr.msk.f32.vlgmr.msra.gmra.mrb[4].mxu1 %vm333_vm4, %v332_v52  ;;  %2420 = vmatprep.subr.bf16.mxu1 %v2567_v23 }
 0x16e   :  { %2316 = vmatprep.mubr.msk.f32.mxu1 %vm2566_vm1, %v2565_v0  ;;  %2422 = vmatpush3.bf16.msra.mxu1 %v2753_v12 }
 0x16f   :  { %2419 = vmatpush3.bf16.msra.mxu0 %v2748_v9  ;;  %2423 = vmatprep.subr.bf16.mxu1 %v2567_v23 }
 0x170   :  { %2426 = vmatprep.subr.bf16.mxu0 %v2567_v23 }
 0x172   :  { %2425 = vmatpush3.bf16.msra.mxu1 %v2766_v16 }
 0x173   :  { %2330 = vmatprep.subr.mxu1 %v2565_v0 }
 0x23a   :  { %v402_v53 = vpop.f32.mrb[2].mxu1 }
 0x23b   :  { %v2278_v54 = vpop.f32.mrb[3].mxu1 }
 0x23d   :  { %v475_v55 = vpop.f32.mrb[4].mxu0 }
 0x23e   :  { %v476_v56 = vadd.f32 %v475_v55, %v402_v53  ;;  %v2287_v57 = vpop.f32.mrb[5].mxu0  ;;  %v861_v53 = vsel %vm70_vm3, %v859_v50, 0.0 }
 0x240   :  { %v548_v61 = vpop.f32.mrb[4].mxu1 }
 0x241   :  { %v552_v63 = vadd.f32 %v548_v61, %v476_v56  ;;  %v2296_v2 = vpop.f32.mrb[5].mxu1 }
 0x243   :  { %v553_v3 = vadd.f32 %v552_v63, %v2732_v60 }
 0x245   :  { %v554_v11 = vmax.f32 %v553_v3, 0.0 }
 0x247   :  { %560 = vrot.lane.b32.xlu1 %v554_v11, %s2570_s19  ;;  %556 = vrot.lane.b32.xlu0 %v554_v11, %s2569_s18  ;;  %v564_v17 = vrot.slane %v554_v11, 1  ;;  %v575_v18 = vrot.slane %v554_v11, 2 }
 0x24b   :  { %571 = vrot.lane.b32.xlu1 %v564_v17, %s2570_s19  ;;  %567 = vrot.lane.b32.xlu0 %v564_v17, %s2569_s18 }
 0x24f   :  { %582 = vrot.lane.b32.xlu1 %v575_v18, %s2570_s19  ;;  %578 = vrot.lane.b32.xlu0 %v575_v18, %s2569_s18 }
 0x2b9   :  { %v557_v19 = vpop.permute.xlu0 %556  ;;  %v561_v22 = vpop.permute.xlu1 %560 }
 0x2ba   :  { %v559_v20 = vmax.f32 %v554_v11, %v557_v19 }
 0x2bc   :  { %v563_v24 = vmax.f32 %v559_v20, %v561_v22 }
 0x2bd   :  { %v568_v26 = vpop.permute.xlu0 %567  ;;  %v572_v31 = vpop.permute.xlu1 %571 }
 0x2be   :  { %v566_v25 = vmax.f32 %v563_v24, %v564_v17 }
 0x2c0   :  { %v570_v29 = vmax.f32 %v566_v25, %v568_v26 }
 0x2c1   :  { %v579_v36 = vpop.permute.xlu0 %578  ;;  %v583_v38 = vpop.permute.xlu1 %582 }
 0x2c2   :  { %v574_v32 = vmax.f32 %v570_v29, %v572_v31 }
 0x2c4   :  { %v577_v33 = vmax.f32 %v574_v32, %v575_v18 }
 0x2c6   :  { %v581_v37 = vmax.f32 %v577_v33, %v579_v36 }
 0x2c8   :  { %v585_v40 = vmax.f32 %v581_v37, %v583_v38 }
 0x2ca   :  { %v587_v43 = vrot.slane %v585_v40, 7  ;;  %2306 = vmatmul.mubr.msk.f32.vlgmr.msra.gmra.mrb[6].mxu0 %vm594_vm6, %v585_v40  ;;  %v590_v48 = vrot.slane %v585_v40, 1 }
 0x2cb   :  { %2428 = vmatpush3.bf16.msra.mxu0 %v2781_v39  ;;  %2327 = vmatprep.mubr.msk.f32.mxu0 %vm2566_vm1, %v2565_v0 }
 0x2cc   :  { %v589_v47 = vsel %vm66_vm2, 0.0, %v587_v43  ;;  %2429 = vmatprep.subr.bf16.mxu0 %v2567_v23  ;;  %v593_v52 = vsel %vm592_vm7, %v590_v48, 0.0 }
 0x2cd   :  { %2317 = vmatmul.mubr.msk.f32.vlgmr.msra.gmra.mrb[6].mxu1 %vm594_vm6, %v589_v47 }
 0x2ce   :  { %2331 = vmatpush3.msra.mxu1 %v2612_v1  ;;  %2332 = vmatprep.mubr.msk.f32.mxu1 %vm2566_vm1, %v2565_v0  ;;  %v858_v1 = vsel %vm66_vm2, 0.0, %v856_v49 }
 0x2cf   :  { %2431 = vmatpush3.bf16.msra.mxu0 %v2794_v45  ;;  %2335 = vmatprep.subr.mxu1 %v2565_v0 }
 0x2d0   :  { %2340 = vmatprep.subr.mxu0 %v2565_v0 }
 0x2d1   :  { %2333 = vmatmul.mubr.msk.f32.vlgmr.msra.gmra.mrb[8].mxu1 %vm72_vm0, %v2106_v44 }
 0x2d2   :  { %2328 = vmatmul.mubr.msk.f32.vlgmr.msra.gmra.mrb[8].mxu0 %vm594_vm6, %v593_v52  ;;  %2336 = vmatpush3.msra.mxu1 %v2624_v4 }
 0x2d3   :  { %2337 = vmatprep.mubr.msk.f32.mxu1 %vm2566_vm1, %v2565_v0  ;;  %2341 = vmatpush3.msra.mxu0 %v2629_v5 }
 0x2d4   :  { %2342 = vmatprep.mubr.msk.f32.mxu0 %vm2566_vm1, %v2565_v0  ;;  %2432 = vmatprep.subr.bf16.mxu1 %v2567_v23 }
 0x2d5   :  { %2338 = vmatmul.mubr.msk.f32.vlgmr.msra.gmra.mrb[10].mxu1 %vm72_vm0, %v858_v1  ;;  %2435 = vmatprep.subr.bf16.mxu0 %v2567_v23 }
 0x2d6   :  { %2343 = vmatmul.mubr.msk.f32.vlgmr.msra.gmra.mrb[10].mxu0 %vm72_vm0, %v861_v53  ;;  %2434 = vmatpush3.bf16.msra.mxu1 %v2659_v21 }
 0x2d7   :  { %2349 = vmatprep.subr.mxu1 %v2565_v0  ;;  %2437 = vmatpush3.bf16.msra.mxu0 %v2672_v27 }
 0x2d8   :  { %2351 = vmatprep.mubr.msk.f32.mxu1 %vm2566_vm1, %v2565_v0  ;;  %2358 = vmatprep.subr.mxu0 %v2565_v0 }
 0x2d9   :  { %2360 = vmatprep.mubr.msk.f32.mxu0 %vm2566_vm1, %v2565_v0 }
 0x2da   :  { %2350 = vmatpush3.msra.mxu1 %v2678_v28 }
 0x2db   :  { %2438 = vmatprep.subr.bf16.mxu1 %v2567_v23  ;;  %2359 = vmatpush3.msra.mxu0 %v2689_v30 }
 0x2dc   :  { %2441 = vmatprep.subr.bf16.mxu0 %v2567_v23 }
 0x39d   :  { %v663_v4 = vpop.f32.mrb[6].mxu0 }
 0x39e   :  { %v2307_v5 = vpop.f32.mrb[7].mxu0 }
 0x3a0   :  { %v736_v21 = vpop.f32.mrb[6].mxu1 }
 0x3a1   :  { %v737_v27 = vadd.f32 %v736_v21, %v663_v4  ;;  %v2318_v54 = vpop.f32.mrb[7].mxu1 }
 0x3a4   :  { %v930_v55 = vpop.f32.mrb[8].mxu1 }
 0x3a5   :  { %v809_v56 = vpop.f32.mrb[8].mxu0  ;;  %v2334_v57 = vpop.f32.mrb[9].mxu1 }
 0x3a6   :  { %v2834_v58 = vadd.f32 %v809_v56, %v737_v27  ;;  %v2329_v59 = vpop.f32.mrb[9].mxu0 }
 0x3a8   :  { %v1003_v61 = vpop.f32.mrb[10].mxu1 }
 0x3a9   :  { %v1004_v63 = vadd.f32 %v1003_v61, %v930_v55  ;;  %v2339_v28 = vpop.f32.mrb[11].mxu1  ;;  %v1076_v2 = vpop.f32.mrb[10].mxu0 }
 0x3aa   :  { %v2344_v3 = vpop.f32.mrb[11].mxu0 }
 0x3ab   :  { %v1080_v6 = vadd.f32 %v1076_v2, %v1004_v63 }
 0x3ad   :  { %v1081_v30 = vadd.f32 %v1080_v6, %v2650_v14 }
 0x3af   :  { %v1082_v7 = vmax.f32 %v1081_v30, 0.0 }
 0x3b1   :  { %1088 = vrot.lane.b32.xlu1 %v1082_v7, %s2569_s18  ;;  %1084 = vrot.lane.b32.xlu0 %v1082_v7, %s2568_s11  ;;  %v1092_v8 = vrot.slane %v1082_v7, 1  ;;  %v1103_v10 = vrot.slane %v1082_v7, 2 }
 0x3b5   :  { %1099 = vrot.lane.b32.xlu1 %v1092_v8, %s2569_s18  ;;  %1095 = vrot.lane.b32.xlu0 %v1092_v8, %s2568_s11 }
 0x3b9   :  { %1110 = vrot.lane.b32.xlu1 %v1103_v10, %s2569_s18  ;;  %1106 = vrot.lane.b32.xlu0 %v1103_v10, %s2568_s11  ;;  %s2571_s11 = smov 96  }
 0x423   :  { %v1085_v11 = vpop.permute.xlu0 %1084  ;;  %v1089_v15 = vpop.permute.xlu1 %1088 }
 0x424   :  { %v1087_v13 = vmax.f32 %v1082_v7, %v1085_v11 }
 0x426   :  { %v1091_v17 = vmax.f32 %v1087_v13, %v1089_v15 }
 0x427   :  { %v1096_v18 = vpop.permute.xlu0 %1095  ;;  %v1100_v20 = vpop.permute.xlu1 %1099 }
 0x428   :  { %v1094_v14 = vmax.f32 %v1091_v17, %v1092_v8 }
 0x42a   :  { %v1098_v19 = vmax.f32 %v1094_v14, %v1096_v18 }
 0x42b   :  { %v1107_v25 = vpop.permute.xlu0 %1106  ;;  %v1111_v29 = vpop.permute.xlu1 %1110 }
 0x42c   :  { %v1102_v22 = vmax.f32 %v1098_v19, %v1100_v20 }
 0x42e   :  { %v1105_v24 = vmax.f32 %v1102_v22, %v1103_v10 }
 0x430   :  { %v1109_v26 = vmax.f32 %v1105_v24, %v1107_v25 }
 0x432   :  { %v1113_v31 = vmax.f32 %v1109_v26, %v1111_v29 }
 0x434   :  { %v1115_v32 = vrot.slane %v1113_v31, 7  ;;  %2352 = vmatmul.mubr.msk.f32.vlgmr.msra.gmra.mrb[12].mxu1 %vm333_vm4, %v1113_v31  ;;  %v1118_v33 = vrot.slane %v1113_v31, 1 }
 0x435   :  { %2440 = vmatpush3.bf16.msra.mxu1 %v2701_v46  ;;  %2369 = vmatprep.mubr.msk.f32.mxu1 %vm2566_vm1, %v2565_v0 }
 0x436   :  { %v1117_v34 = vsel %vm66_vm2, 0.0, %v1115_v32  ;;  %2367 = vmatprep.subr.mxu1 %v2565_v0  ;;  %v1120_v35 = vsel %vm331_vm5, %v1118_v33, 0.0  ;;  %v1643_v33 = vld [vmem:[%s3231_s3 + $0x8] sm:$0xff] }
 0x437   :  { %2361 = vmatmul.mubr.msk.f32.vlgmr.msra.gmra.mrb[12].mxu0 %vm333_vm4, %v1117_v34  ;;  %v1647_v34 = vld [vmem:[%s3231_s3 + $0x28] sm:$0xff] }
 0x438   :  { %2443 = vmatpush3.bf16.msra.mxu0 %v2734_v62  ;;  %2380 = vmatprep.mubr.msk.f32.mxu0 %vm2566_vm1, %v2565_v0 }
 0x439   :  { %2368 = vmatpush3.msra.mxu1 %v2712_v51  ;;  %2444 = vmatprep.subr.bf16.mxu0 %v2567_v23 }
 0x43a   :  { %2370 = vmatmul.mubr.msk.f32.vlgmr.msra.gmra.mrb[14].mxu1 %vm333_vm4, %v1120_v35  ;;  %2447 = vmatprep.subr.bf16.mxu1 %v2567_v23  ;;  %v1645_v35 = vld [vmem:[%s3231_s3 + $0x18] sm:$0xff] }
 0x43b   :  { %2449 = vmatpush3.bf16.msra.mxu1 %v2753_v12  ;;  %2391 = vmatprep.mubr.msk.f32.mxu1 %vm2566_vm1, %v2565_v0 }
 0x43c   :  { %2446 = vmatpush3.bf16.msra.mxu0 %v2748_v9  ;;  %2450 = vmatprep.subr.bf16.mxu1 %v2567_v23 }
 0x43d   :  { %2453 = vmatprep.subr.bf16.mxu0 %v2567_v23 }
 0x43f   :  { %2452 = vmatpush3.bf16.msra.mxu1 %v2766_v16  ;;  %v2871_v16 = vld [vmem:[%s3230_s2 + $0x2] ss:$0 sm:$0xff] }
 0x440   :  { %v814_v43 = vadd.f32 %v2834_v58, %v2871_v16 }
 0x507   :  { %v1189_v46 = vpop.f32.mrb[12].mxu1 }
 0x508   :  { %v2353_v51 = vpop.f32.mrb[13].mxu1 }
 0x509   :  { %v1649_v51 = vld [vmem:[%s3231_s3 + $0x38] sm:$0xff] }
 0x50a   :  { %v1262_v62 = vpop.f32.mrb[12].mxu0 }
 0x50b   :  { %v1263_v36 = vadd.f32 %v1262_v62, %v1189_v46  ;;  %v2362_v37 = vpop.f32.mrb[13].mxu0  ;;  %v2459_v46 = vpack.c.bf16 %v1647_v34, %v1643_v33  ;;  %v1642_v62 = vld [vmem:[%s3231_s3] sm:$0xff]  ;;  %v1894_v34 = vld [vmem:[%s3232_s4 + $0x188] sm:$0xff] }
 0x50d   :  { %v1335_v38 = vpop.f32.mrb[14].mxu1  ;;  %2460 = vmatprep.subr.bf16.mxu1 %v2459_v46 }
 0x50e   :  { %v1339_v40 = vadd.f32 %v1335_v38, %v1263_v36  ;;  %v2371_v41 = vpop.f32.mrb[15].mxu1  ;;  %v1646_v36 = vld [vmem:[%s3231_s3 + $0x20] sm:$0xff]  ;;  %v2475_v38 = vpack.c.bf16 %v1649_v51, %v1645_v35 }
 0x50f   :  { %v1644_v41 = vld [vmem:[%s3231_s3 + $0x10] sm:$0xff] }
 0x510   :  { %v1340_v12 = vadd.f32 %v1339_v40, %v2732_v60  ;;  %v815_v60 = vmax.f32 %v814_v43, 0.0  ;;  %v2461_v40 = vpack.c.bf16 %v1646_v36, %v1642_v62  ;;  %v1653_v43 = vld [vmem:[%s3231_s3 + $0x58] sm:$0xff] }
 0x512   :  { %v1341_v42 = vmax.f32 %v1340_v12, 0.0  ;;  %v825_v47 = vrot.slane %v815_v60, 1  ;;  %v836_v48 = vrot.slane %v815_v60, 2  ;;  %v1648_v12 = vld [vmem:[%s3231_s3 + $0x30] sm:$0xff] }
 0x514   :  { %1347 = vrot.lane.b32.xlu1 %v1341_v42, %s2570_s19  ;;  %1343 = vrot.lane.b32.xlu0 %v1341_v42, %s2569_s18  ;;  %v1351_v9 = vrot.slane %v1341_v42, 1  ;;  %v1362_v44 = vrot.slane %v1341_v42, 2 }
 0x518   :  { %1358 = vrot.lane.b32.xlu1 %v1351_v9, %s2570_s19  ;;  %1354 = vrot.lane.b32.xlu0 %v1351_v9, %s2569_s18 }
 0x51c   :  { %1369 = vrot.lane.b32.xlu1 %v1362_v44, %s2570_s19  ;;  %1365 = vrot.lane.b32.xlu0 %v1362_v44, %s2569_s18  ;;  %s2572_s18 = smov 32  }
 0x520   :  { %817 = vrot.lane.b32.xlu1 %v815_v60, %s2570_s19 }
 0x524   :  { %821 = vrot.lane.b32.xlu1 %v815_v60, %s2571_s11 }
 0x528   :  { %828 = vrot.lane.b32.xlu1 %v825_v47, %s2570_s19 }
 0x52c   :  { %832 = vrot.lane.b32.xlu1 %v825_v47, %s2571_s11 }
 0x530   :  { %839 = vrot.lane.b32.xlu1 %v836_v48, %s2570_s19 }
 0x534   :  { %843 = vrot.lane.b32.xlu1 %v836_v48, %s2571_s11 }
 0x586   :  { %v1348_v49 = vpop.permute.xlu1 %1347  ;;  %v1344_v50 = vpop.permute.xlu0 %1343 }
 0x587   :  { %v1346_v52 = vmax.f32 %v1341_v42, %v1344_v50  ;;  %v1651_v42 = vld [vmem:[%s3231_s3 + $0x48] sm:$0xff]  ;;  %v1652_v50 = vld [vmem:[%s3231_s3 + $0x50] sm:$0xff] }
 0x589   :  { %v1350_v1 = vmax.f32 %v1346_v52, %v1348_v49  ;;  %v1654_v49 = vld [vmem:[%s3231_s3 + $0x60] sm:$0xff] }
 0x58a   :  { %v1359_v53 = vpop.permute.xlu1 %1358  ;;  %v1355_v5 = vpop.permute.xlu0 %1354 }
 0x58b   :  { %v1353_v4 = vmax.f32 %v1350_v1, %v1351_v9  ;;  %v2477_v9 = vpack.c.bf16 %v1648_v12, %v1644_v41  ;;  %v1656_v1 = vld [vmem:[%s3231_s3 + $0x70] sm:$0xff]  ;;  %v1878_v41 = vld [vmem:[%s3232_s4 + $0x108] sm:$0xff] }
 0x58c   :  { %v1863_v12 = vld [vmem:[%s3232_s4 + $0x90] sm:$0xff] }
 0x58d   :  { %v1357_v21 = vmax.f32 %v1353_v4, %v1355_v5  ;;  %v1663_v4 = vld [vmem:[%s3231_s3 + $0xa8] sm:$0xff]  ;;  %v2481_v5 = vpack.c.bf16 %v1656_v1, %v1652_v50  ;;  %v1847_v50 = vld [vmem:[%s3232_s4 + $0x10] sm:$0xff] }
 0x58e   :  { %v1370_v27 = vpop.permute.xlu1 %1369  ;;  %v1366_v56 = vpop.permute.xlu0 %1365 }
 0x58f   :  { %v1361_v54 = vmax.f32 %v1357_v21, %v1359_v53  ;;  %v1659_v53 = vld [vmem:[%s3231_s3 + $0x88] sm:$0xff] }
 0x590   :  { %v2467_v21 = vpack.c.bf16 %v1663_v4, %v1659_v53 }
 0x591   :  { %v1364_v55 = vmax.f32 %v1361_v54, %v1362_v44  ;;  %v1657_v44 = vld [vmem:[%s3231_s3 + $0x78] sm:$0xff] }
 0x592   :  { %v818_v57 = vpop.permute.xlu1 %817  ;;  %v1665_v54 = vld [vmem:[%s3231_s3 + $0xb8] sm:$0xff] }
 0x593   :  { %v1368_v58 = vmax.f32 %v1364_v55, %v1366_v56  ;;  %v820_v61 = vmax.f32 %v815_v60, %v818_v57  ;;  %v1658_v55 = vld [vmem:[%s3231_s3 + $0x80] sm:$0xff] }
 0x594   :  { %v1662_v57 = vld [vmem:[%s3231_s3 + $0xa0] sm:$0xff] }
 0x595   :  { %v1372_v59 = vmax.f32 %v1368_v58, %v1370_v27  ;;  %v1661_v27 = vld [vmem:[%s3231_s3 + $0x98] sm:$0xff]  ;;  %v1660_v58 = vld [vmem:[%s3231_s3 + $0x90] sm:$0xff] }
 0x596   :  { %v822_v63 = vpop.permute.xlu1 %821  ;;  %v2483_v56 = vpack.c.bf16 %v1665_v54, %v1661_v27  ;;  %v1865_v27 = vld [vmem:[%s3232_s4 + $0xa0] sm:$0xff] }
 0x597   :  { %v1374_v28 = vrot.slane %v1372_v59, 7  ;;  %v824_v2 = vmax.f32 %v820_v61, %v822_v63  ;;  %2381 = vmatmul.mubr.msk.f32.vlgmr.msra.gmra.mrb[14].mxu0 %vm594_vm6, %v1372_v59  ;;  %v1377_v30 = vrot.slane %v1372_v59, 1  ;;  %v1664_v59 = vld [vmem:[%s3231_s3 + $0xb0] sm:$0xff]  ;;  %v2469_v61 = vpack.c.bf16 %v1662_v57, %v1658_v55  ;;  %v1897_v55 = vld [vmem:[%s3232_s4 + $0x1a0] sm:$0xff] }
 0x598   :  { %2455 = vmatpush3.bf16.msra.mxu0 %v2781_v39  ;;  %2402 = vmatprep.mubr.msk.f32.mxu0 %vm2566_vm1, %v2565_v0  ;;  %v2485_v63 = vpack.c.bf16 %v1664_v59, %v1660_v58  ;;  %v1849_v59 = vld [vmem:[%s3232_s4 + $0x20] sm:$0xff] }
 0x599   :  { %v827_v3 = vmax.f32 %v824_v2, %v825_v47  ;;  %v1376_v6 = vsel %vm66_vm2, 0.0, %v1374_v28  ;;  %2456 = vmatprep.subr.bf16.mxu0 %v2567_v23  ;;  %v1379_v39 = vsel %vm592_vm7, %v1377_v30, 0.0  ;;  %v2479_v47 = vpack.c.bf16 %v1657_v44, %v1653_v43  ;;  %v1895_v43 = vld [vmem:[%s3232_s4 + $0x190] sm:$0xff]  ;;  %v1896_v44 = vld [vmem:[%s3232_s4 + $0x198] sm:$0xff] }
 0x59a   :  { %v829_v7 = vpop.permute.xlu1 %828  ;;  %2392 = vmatmul.mubr.msk.f32.vlgmr.msra.gmra.mrb[16].mxu1 %vm594_vm6, %v1376_v6  ;;  %v2527_v4 = vpack.c.bf16 %v1896_v44, %v1895_v43  ;;  %v1905_v43 = vld [vmem:[%s3232_s4 + $0x1e0] sm:$0xff]  ;;  %v1906_v44 = vld [vmem:[%s3232_s4 + $0x1e8] sm:$0xff] }
 0x59b   :  { %1763 = vmatprep.mubr.f32.mxu1 %v2565_v0  ;;  %v831_v8 = vmax.f32 %v827_v3, %v829_v7  ;;  %2462 = vmatpush1.bf16.msra.mxu1 %v2461_v40  ;;  %v1877_v40 = vld [vmem:[%s3232_s4 + $0x100] sm:$0xff] }
 0x59c   :  { %2458 = vmatpush3.bf16.msra.mxu0 %v2794_v45 }
 0x59d   :  { %2476 = vmatprep.subr.bf16.mxu0 %v2475_v38  ;;  %v1846_v38 = vld [vmem:[%s3232_s4 + $0x8] sm:$0xff] }
 0x59e   :  { %v833_v10 = vpop.permute.xlu1 %832 }
 0x59f   :  { %v835_v11 = vmax.f32 %v831_v8, %v833_v10  ;;  %2403 = vmatmul.mubr.msk.f32.vlgmr.msra.gmra.mrb[16].mxu0 %vm594_vm6, %v1379_v39  ;;  %v1667_v8 = vld [vmem:[%s3231_s3 + $0xc8] sm:$0xff]  ;;  %v1669_v39 = vld [vmem:[%s3231_s3 + $0xd8] sm:$0xff] }
 0x5a0   :  { %1834 = vmatprep.mubr.f32.mxu0 %v2565_v0  ;;  %2478 = vmatpush1.bf16.msra.mxu0 %v2477_v9  ;;  %v1671_v10 = vld [vmem:[%s3231_s3 + $0xe8] sm:$0xff] }
 0x5a1   :  { %v838_v13 = vmax.f32 %v835_v11, %v836_v48  ;;  %v1650_v48 = vld [vmem:[%s3231_s3 + $0x40] sm:$0xff]  ;;  %2480 = vmatprep.subr.bf16.mxu0 %v2479_v47  ;;  %v2471_v11 = vpack.c.bf16 %v1671_v10, %v1667_v8  ;;  %v1900_v8 = vld [vmem:[%s3232_s4 + $0x1b8] sm:$0xff] }
 0x5a2   :  { %v840_v15 = vpop.permute.xlu1 %839  ;;  %v2465_v52 = vpack.c.bf16 %v1654_v49, %v1650_v48  ;;  %v2525_v49 = vpack.c.bf16 %v1878_v41, %v1877_v40 }
 0x5a3   :  { %v842_v23 = vmax.f32 %v838_v13, %v840_v15  ;;  %v1673_v13 = vld [vmem:[%s3231_s3 + $0xf8] sm:$0xff]  ;;  %v1666_v15 = vld [vmem:[%s3231_s3 + $0xc0] sm:$0xff] }
 0x5a4   :  { %2482 = vmatpush1.bf16.msra.mxu0 %v2481_v5  ;;  %v1879_v5 = vld [vmem:[%s3232_s4 + $0x110] sm:$0xff] }
 0x5a5   :  { %2484 = vmatprep.subr.bf16.mxu0 %v2483_v56  ;;  %v1898_v56 = vld [vmem:[%s3232_s4 + $0x1a8] sm:$0xff] }
 0x5a6   :  { %v844_v17 = vpop.permute.xlu1 %843 }
 0x5a7   :  { %v2897_v14 = vmax.f32 %v842_v23, %v844_v17  ;;  %v1670_v23 = vld [vmem:[%s3231_s3 + $0xe0] sm:$0xff] }
 0x5a8   :  { %2486 = vmatpush1.bf16.msra.mxu0 %v2485_v63 }
 0x5a9   :  { %v848_v18 = vrot.slane %v2897_v14, 1 }
 0x5ab   :  { %849 = vrot.lane.b32.xlu1 %v848_v18, %s2572_s18  ;;  %v2487_v18 = vpack.c.bf16 %v1673_v13, %v1669_v39  ;;  %v1852_v13 = vld [vmem:[%s3232_s4 + $0x38] sm:$0xff] }
 0x5ad   :  { %2488 = vmatprep.subr.bf16.mxu0 %v2487_v18  ;;  %v1884_v18 = vld [vmem:[%s3232_s4 + $0x138] sm:$0xff] }
 0x66a   :  { %v1448_v45 = vpop.f32.mrb[14].mxu0 }
 0x66b   :  { %v2382_v19 = vpop.f32.mrb[15].mxu0 }
 0x66c   :  { %v1668_v19 = vld [vmem:[%s3231_s3 + $0xd0] sm:$0xff] }
 0x66d   :  { %v1521_v20 = vpop.f32.mrb[16].mxu1 }
 0x66e   :  { %v1522_v22 = vadd.f32 %v1521_v20, %v1448_v45  ;;  %v2393_v24 = vpop.f32.mrb[17].mxu1  ;;  %v2473_v45 = vpack.c.bf16 %v1670_v23, %v1666_v15  ;;  %v1672_v20 = vld [vmem:[%s3231_s3 + $0xf0] sm:$0xff] }
 0x66f   :  { %v2489_v24 = vpack.c.bf16 %v1672_v20, %v1668_v19  ;;  %v1870_v19 = vld [vmem:[%s3232_s4 + $0xc8] sm:$0xff]  ;;  %v1901_v20 = vld [vmem:[%s3232_s4 + $0x1c0] sm:$0xff] }
 0x671   :  { %2490 = vmatpush1.bf16.msra.mxu0 %v2489_v24 }
 0x672   :  { %v1594_v25 = vpop.f32.mrb[16].mxu0 }
 0x673   :  { %v1598_v26 = vadd.f32 %v1594_v25, %v1522_v22  ;;  %v2404_v29 = vpop.f32.mrb[17].mxu0 }
 0x675   :  { %v1599_v0 = vadd.f32 %v1598_v26, %v2871_v16  ;;  %v1655_v16 = vld [vmem:[%s3231_s3 + $0x68] sm:$0xff] }
 0x676   :  { %v2463_v60 = vpack.c.bf16 %v1655_v16, %v1651_v42  ;;  %v850_v42 = vpop.permute.xlu1 %849  ;;  %v1864_v16 = vld [vmem:[%s3232_s4 + $0x98] sm:$0xff] }
 0x677   :  { %v1600_v31 = vmax.f32 %v1599_v0, 0.0  ;;  %v1861_v0 = vld [vmem:[%s3232_s4 + $0x80] sm:$0xff]  ;;  %v852_v1 = vsel %vm594_vm6, %v2897_v14, %v850_v42  ;;  %v2495_v53 = vpack.c.bf16 %v1864_v16, %v1863_v12  ;;  %v1866_v14 = vld [vmem:[%s3232_s4 + $0xa8] sm:$0xff]  ;;  %v1887_v12 = vld [vmem:[%s3232_s4 + $0x150] sm:$0xff] }
 0x678   :  { %2464 = vmatprep.subr.bf16.mxu1 %v2463_v60  ;;  %v2499_v63 = vpack.c.bf16 %v1866_v14, %v1865_v27  ;;  %v1888_v42 = vld [vmem:[%s3232_s4 + $0x158] sm:$0xff]  ;;  %v1874_v16 = vld [vmem:[%s3232_s4 + $0xe8] sm:$0xff] }
 0x679   :  { %1602 = vrot.lane.b32.xlu0 %v1600_v31, %s2570_s19  ;;  %v2904_v32 = vrot.slane %v1600_v31, 1  ;;  %v2928_v37 = vrot.slane %v1600_v31, 2  ;;  %2466 = vmatpush1.bf16.msra.mxu1 %v2465_v52  ;;  %v1848_v52 = vld [vmem:[%s3232_s4 + $0x18] sm:$0xff] }
 0x67a   :  { %2468 = vmatprep.subr.bf16.mxu1 %v2467_v21  ;;  %v1880_v21 = vld [vmem:[%s3232_s4 + $0x118] sm:$0xff]  ;;  %v2497_v57 = vpack.c.bf16 %v1848_v52, %v1847_v50  ;;  %v1857_v50 = vld [vmem:[%s3232_s4 + $0x60] sm:$0xff]  ;;  %v1858_v52 = vld [vmem:[%s3232_s4 + $0x68] sm:$0xff] }
 0x67b   :  { %v2529_v58 = vpack.c.bf16 %v1880_v21, %v1879_v5  ;;  %v1875_v21 = vld [vmem:[%s3232_s4 + $0xf0] sm:$0xff]  ;;  %v1876_v27 = vld [vmem:[%s3232_s4 + $0xf8] sm:$0xff] }
 0x67c   :  { %v2519_v14 = vpack.c.bf16 %v1876_v27, %v1875_v21 }
 0x67d   :  { %1606 = vrot.lane.b32.xlu0 %v1600_v31, %s2571_s11  ;;  %2470 = vmatpush1.bf16.msra.mxu1 %v2469_v61  ;;  %v1850_v61 = vld [vmem:[%s3232_s4 + $0x28] sm:$0xff] }
 0x67e   :  { %2472 = vmatprep.subr.bf16.mxu1 %v2471_v11  ;;  %v2501_v10 = vpack.c.bf16 %v1850_v61, %v1849_v59  ;;  %v1851_v11 = vld [vmem:[%s3232_s4 + $0x30] sm:$0xff] }
 0x67f   :  { %v2505_v24 = vpack.c.bf16 %v1852_v13, %v1851_v11  ;;  %v1891_v61 = vld [vmem:[%s3232_s4 + $0x170] sm:$0xff] }
 0x681   :  { %1613 = vrot.lane.b32.xlu0 %v2904_v32, %s2570_s19  ;;  %2474 = vmatpush1.bf16.msra.mxu1 %v2473_v45  ;;  %v1869_v45 = vld [vmem:[%s3232_s4 + $0xc0] sm:$0xff] }
 0x685   :  { %1617 = vrot.lane.b32.xlu0 %v2904_v32, %s2571_s11 }
 0x689   :  { %1624 = vrot.lane.b32.xlu0 %v2928_v37, %s2570_s19 }
 0x68d   :  { %1628 = vrot.lane.b32.xlu0 %v2928_v37, %s2571_s11 }
 0x6eb   :  { %v1603_v28 = vpop.permute.xlu0 %1602 }
 0x6ec   :  { %v1605_v2 = vmax.f32 %v1600_v31, %v1603_v28  ;;  %v1862_v31 = vld [vmem:[%s3232_s4 + $0x88] sm:$0xff]  ;;  %v2531_v28 = vpack.c.bf16 %v1898_v56, %v1897_v55  ;;  %v1908_v55 = vld [vmem:[%s3232_s4 + $0x1f8] sm:$0xff]  ;;  %v1859_v56 = vld [vmem:[%s3232_s4 + $0x70] sm:$0xff] }
 0x6ed   :  { %v2491_v33 = vpack.c.bf16 %v1862_v31, %v1861_v0  ;;  %v2507_v0 = vpack.c.bf16 %v1870_v19, %v1869_v45 }
 0x6ef   :  { %v1607_v3 = vpop.permute.xlu0 %1606  ;;  %2492 = vmatprep.subr.bf16.mxu1 %v2491_v33  ;;  %v1886_v33 = vld [vmem:[%s3232_s4 + $0x148] sm:$0xff] }
 0x6f0   :  { %v1609_v6 = vmax.f32 %v1605_v2, %v1607_v3  ;;  %v1881_v2 = vld [vmem:[%s3232_s4 + $0x120] sm:$0xff]  ;;  %v1882_v3 = vld [vmem:[%s3232_s4 + $0x128] sm:$0xff] }
 0x6f1   :  { %v2533_v39 = vpack.c.bf16 %v1882_v3, %v1881_v2  ;;  %v1675_v2 = vlaneseq }
 0x6f2   :  { %v1612_v30 = vmax.f32 %v1609_v6, %v2904_v32  ;;  %v1893_v32 = vld [vmem:[%s3232_s4 + $0x180] sm:$0xff]  ;;  %v1867_v6 = vld [vmem:[%s3232_s4 + $0xb0] sm:$0xff] }
 0x6f3   :  { %v1614_v7 = vpop.permute.xlu0 %1613  ;;  %v2523_v46 = vpack.c.bf16 %v1894_v34, %v1893_v32  ;;  %v1885_v32 = vld [vmem:[%s3232_s4 + $0x140] sm:$0xff]  ;;  %v1871_v34 = vld [vmem:[%s3232_s4 + $0xd0] sm:$0xff]  ;;  %v1676_v3 = vshrl.u32 %v1675_v2, 7 }
 0x6f4   :  { %v1616_v17 = vmax.f32 %v1612_v30, %v1614_v7  ;;  %v1868_v30 = vld [vmem:[%s3232_s4 + $0xb8] sm:$0xff]  ;;  %v1899_v7 = vld [vmem:[%s3232_s4 + $0x1b0] sm:$0xff] }
 0x6f5   :  { %2524 = vmatprep.subr.bf16.mxu0 %v2523_v46  ;;  %v2503_v15 = vpack.c.bf16 %v1868_v30, %v1867_v6  ;;  %v2535_v23 = vpack.c.bf16 %v1900_v8, %v1899_v7  ;;  %v1903_v46 = vld [vmem:[%s3232_s4 + $0x1d0] sm:$0xff]  ;;  %v1677_v6 = vsub.s32 0, %v1676_v3  ;;  %v1685_v30 = vsub.s32 2, %v1676_v3 }
 0x6f6   :  { %v2096_v7 = vld [vmem:[%s3230_s2 + $0x3] ss:$8 sm:$0xf]  ;;  %v1681_v8 = vsub.s32 1, %v1676_v3 }
 0x6f7   :  { %v1618_v22 = vpop.permute.xlu0 %1617  ;;  %v1686_v11 = vrot.slane %v2096_v7, %v1685_v30 }
 0x6f8   :  { %v1620_v25 = vmax.f32 %v1616_v17, %v1618_v22  ;;  %v1883_v17 = vld [vmem:[%s3232_s4 + $0x130] sm:$0xff]  ;;  %v1902_v22 = vld [vmem:[%s3232_s4 + $0x1c8] sm:$0xff]  ;;  %v1682_v13 = vrot.slane %v2096_v7, %v1681_v8 }
 0x6f9   :  { %v2539_v31 = vpack.c.bf16 %v1902_v22, %v1901_v20 }
 0x6fa   :  { %v1623_v26 = vmax.f32 %v1620_v25, %v2928_v37  ;;  %v1845_v37 = vld [vmem:[%s3232_s4] sm:$0xff]  ;;  %v2537_v25 = vpack.c.bf16 %v1884_v18, %v1883_v17 }
 0x6fb   :  { %v1625_v29 = vpop.permute.xlu0 %1624  ;;  %v2493_v48 = vpack.c.bf16 %v1846_v38, %v1845_v37  ;;  %v1855_v37 = vld [vmem:[%s3232_s4 + $0x50] sm:$0xff]  ;;  %v1856_v38 = vld [vmem:[%s3232_s4 + $0x58] sm:$0xff] }
 0x6fc   :  { %v1627_v35 = vmax.f32 %v1623_v26, %v1625_v29  ;;  %v1853_v26 = vld [vmem:[%s3232_s4 + $0x40] sm:$0xff]  ;;  %v1854_v29 = vld [vmem:[%s3232_s4 + $0x48] sm:$0xff] }
 0x6ff   :  { %v1629_v51 = vpop.permute.xlu0 %1628 }
 0x700   :  { %v1631_v62 = vmax.f32 %v1627_v35, %v1629_v51  ;;  %v1872_v35 = vld [vmem:[%s3232_s4 + $0xd8] sm:$0xff] }
 0x701   :  { %v1904_v51 = vld [vmem:[%s3232_s4 + $0x1d8] sm:$0xff]  ;;  %v2511_v40 = vpack.c.bf16 %v1872_v35, %v1871_v34 }
 0x702   :  { %v1633_v36 = vrot.slane %v1631_v62, 1  ;;  %v2543_v41 = vpack.c.bf16 %v1904_v51, %v1903_v46 }
 0x704   :  { %1634 = vrot.lane.b32.xlu0 %v1633_v36, %s2572_s18  ;;  %v2541_v36 = vpack.c.bf16 %v1886_v33, %v1885_v32  ;;  %v60_v33 = vld [vmem:[%s3230_s2 + $0x4] ss:$0 sm:$0xff] }
 0x776   :  { %v1635_v9 = vpop.permute.xlu0 %1634 }
 0x777   :  { %v1637_v60 = vsel %vm594_vm6, %v1631_v62, %v1635_v9  ;;  %v2509_v62 = vpack.c.bf16 %v1854_v29, %v1853_v26  ;;  %v1873_v9 = vld [vmem:[%s3232_s4 + $0xe0] sm:$0xff] }
 0x778   :  { %v1639_v47 = vrot.slane %v1637_v60, 7  ;;  %v2513_v60 = vpack.c.bf16 %v1856_v38, %v1855_v37  ;;  %v2118_v37 = vld [vmem:[%s3233_s5] ss:$0 sm:$0xff] }
 0x77a   :  { %v1641_v54 = vsel %vm66_vm2, %v852_v1, %v1639_v47  ;;  %v2545_v47 = vpack.c.bf16 %v1888_v42, %v1887_v12  ;;  %v1889_v1 = vld [vmem:[%s3232_s4 + $0x160] sm:$0xff] }
 0x77b   :  { %2116 = vmatmul.mubr.msk.f32.vlgmr.msra.gmra.mrb[18].mxu1 %vm1695_vm8, %v1641_v54  ;;  %2117 = vmatmul.mubr.msk.f32.vlgmr.msra.gmra.mrb[18].mxu0 %vm1695_vm8, %v1641_v54  ;;  %v1907_v54 = vld [vmem:[%s3232_s4 + $0x1f0] sm:$0xff]  ;;  %v61_v12 = vld [vmem:[%s3230_s2 + $0x5] ss:$0 sm:$0xff] }
 0x77c   :  { %2494 = vmatpush3.bf16.msra.mxu1 %v2493_v48  ;;  %2526 = vmatpush3.bf16.msra.mxu0 %v2525_v49  ;;  %v2515_v48 = vpack.c.bf16 %v1874_v16, %v1873_v9  ;;  %v2547_v49 = vpack.c.bf16 %v1906_v44, %v1905_v43 }
 0x77d   :  { %2496 = vmatprep.subr.bf16.mxu1 %v2495_v53  ;;  %2528 = vmatprep.subr.bf16.mxu0 %v2527_v4  ;;  %v2517_v53 = vpack.c.bf16 %v1858_v52, %v1857_v50  ;;  %v1890_v4 = vld [vmem:[%s3232_s4 + $0x168] sm:$0xff] }
 0x77e   :  { %v2549_v5 = vpack.c.bf16 %v1890_v4, %v1889_v1 }
 0x780   :  { %2498 = vmatpush3.bf16.msra.mxu1 %v2497_v57  ;;  %2530 = vmatpush3.bf16.msra.mxu0 %v2529_v58  ;;  %v1860_v57 = vld [vmem:[%s3232_s4 + $0x78] sm:$0xff]  ;;  %v2551_v58 = vpack.c.bf16 %v1908_v55, %v1907_v54 }
 0x781   :  { %2500 = vmatprep.subr.bf16.mxu1 %v2499_v63  ;;  %2532 = vmatprep.subr.bf16.mxu0 %v2531_v28  ;;  %v2521_v59 = vpack.c.bf16 %v1860_v57, %v1859_v56  ;;  %v1892_v63 = vld [vmem:[%s3232_s4 + $0x178] sm:$0xff] }
 0x782   :  { %v2553_v28 = vpack.c.bf16 %v1892_v63, %v1891_v61 }
 0x784   :  { %2502 = vmatpush3.bf16.msra.mxu1 %v2501_v10  ;;  %2534 = vmatpush3.bf16.msra.mxu0 %v2533_v39  ;;  %v1689_v10 = vsub.s32 3, %v1676_v3  ;;  %v1678_v39 = vrot.slane %v2096_v7, %v1677_v6 }
 0x785   :  { %2504 = vmatprep.subr.bf16.mxu1 %v2503_v15  ;;  %2536 = vmatprep.subr.bf16.mxu0 %v2535_v23 }
 0x786   :  { %v1690_v15 = vrot.slane %v2096_v7, %v1689_v10 }
 0x788   :  { %2506 = vmatpush3.bf16.msra.mxu1 %v2505_v24  ;;  %2538 = vmatpush3.bf16.msra.mxu0 %v2537_v25 }
 0x789   :  { %2508 = vmatprep.subr.bf16.mxu1 %v2507_v0  ;;  %2540 = vmatprep.subr.bf16.mxu0 %v2539_v31 }
 0x78c   :  { %2510 = vmatpush3.bf16.msra.mxu1 %v2509_v62  ;;  %2542 = vmatpush3.bf16.msra.mxu0 %v2541_v36 }
 0x78d   :  { %2512 = vmatprep.subr.bf16.mxu1 %v2511_v40  ;;  %2544 = vmatprep.subr.bf16.mxu0 %v2543_v41 }
 0x790   :  { %2514 = vmatpush3.bf16.msra.mxu1 %v2513_v60  ;;  %2546 = vmatpush3.bf16.msra.mxu0 %v2545_v47 }
 0x791   :  { %2516 = vmatprep.subr.bf16.mxu1 %v2515_v48  ;;  %2548 = vmatprep.subr.bf16.mxu0 %v2547_v49 }
 0x794   :  { %2518 = vmatpush3.bf16.msra.mxu1 %v2517_v53  ;;  %2550 = vmatpush3.bf16.msra.mxu0 %v2549_v5 }
 0x795   :  { %2520 = vmatprep.subr.bf16.mxu1 %v2519_v14  ;;  %2552 = vmatprep.subr.bf16.mxu0 %v2551_v58 }
 0x798   :  { %2522 = vmatpush3.bf16.msra.mxu1 %v2521_v59  ;;  %2554 = vmatpush3.bf16.msra.mxu0 %v2553_v28 }
 0x84e   :  { %v1765_v23 = vpop.f32.mrb[18].mxu1  ;;  %v1836_v17 = vpop.f32.mrb[18].mxu0 }
 0x84f   :  { %v1766_v18 = vadd.f32 %v1765_v23, %v1678_v39  ;;  %v1837_v45 = vadd.f32 %v1836_v17, %v1686_v11  ;;  %v1767_v19 = vpop.f32.mrb[19].mxu1  ;;  %v1838_v20 = vpop.f32.mrb[19].mxu0 }
 0x850   :  { %v1768_v22 = vadd.f32 %v1767_v19, %v1682_v13  ;;  %v1839_v24 = vadd.f32 %v1838_v20, %v1690_v15 }
 0x851   :  { %v1841_v29 = vmax.f32 %v1766_v18, 0.0  ;;  %v1843_v0 = vmax.f32 %v1837_v45, 0.0 }
 0x852   :  { %v1842_v25 = vmax.f32 %v1768_v22, 0.0  ;;  %v1844_v26 = vmax.f32 %v1839_v24, 0.0 }
 0x854   :  { %1973 = vmatprep.mubr.f32.mxu1 %v1842_v25  ;;  %2043 = vmatprep.mubr.f32.mxu0 %v1844_v26 }
 0x855   :  { %1974 = vmatmul.mubr.f32.vlgmr.msra.gmra.mrb[20].mxu1 %v1841_v29  ;;  %2044 = vmatmul.mubr.f32.vlgmr.msra.gmra.mrb[20].mxu0 %v1843_v0 }
 0x928   :  { %v2217_v31 = vpop.f32.mrb[20].mxu1  ;;  %v2252_v32 = vpop.f32.mrb[20].mxu0 }
 0x929   :  { %v2218_v34 = vpop.f32.mrb[21].mxu1  ;;  %v2253_v35 = vpop.f32.mrb[21].mxu0 }
 0x92a   :  { %v2219_v46 = vadd.f32 %v2218_v34, %v2217_v31  ;;  %v2254_v51 = vadd.f32 %v2253_v35, %v2252_v32 }
 0x92c   :  { %v1976_v62 = vadd.f32 %v2219_v46, %v60_v33 }
 0x92e   :  { %v2046_v36 = vadd.f32 %v2254_v51, %v1976_v62 }
 0x930   :  { %v2049_v38 = vmax.f32 %v2046_v36, 0.0 }
 0x932   :  { %v2057_v40 = vmul.f32 %v2118_v37, %v2049_v38 }
 0x934   :  { %v2059_v41 = vsel %vm2058_vm9, %v2057_v40, 0.0 }
 0x935   :  { %2060 = vadd.xlane.f32.xlu0 %v2059_v41 }
 0x9c2   :  { %v2061_v42 = vpop.xlane.xlu0 %2060 }
 0x9c3   :  { %v2062_v9 = vadd.f32 %v2061_v42, %v61_v12 }
 0x9c5   :  { %v2063_v16 = vmul.f32 0.5, %v2062_v9 }
 0x9c7   :  { %2563 = vtanh.f32 %v2063_v16 }
 0x9d1   :  { %v2564_v43 = vpop.eup %2563 }
 0x9d2   :  { %v2065_v44 = vadd.f32 1.0, %v2564_v43 }
 0x9d4   :  { %v2066_v60 = vmul.f32 0.5, %v2065_v44 }
 0x9d6   :  { %2068 = vst.msk [vmem:[%s3234_s6] sm:$0x3] %vm2067_vm10, %v2066_v60 }

</bundles_post_ra>
